<compile_context>
chip_gen: v7x
topology: tpu7x:2x2x1
jax: 0.10.0
libtpu: 0.0.40
codegen_flags: <defaults>
</compile_context>

<pallas_src>
import functools

import jax
import jax.numpy as jnp
from jax.experimental import pallas as pl
from jax.experimental.pallas import tpu as pltpu


def _ceil_to(x, m):
    return (x + m - 1) // m * m


# ----------------------------- Pallas kernels ------------------------------ #
def _conv_kernel(x_ref, w_ref, b_ref, o_ref, *, negative_slope):
    # Single fused step: (tm, Kp) @ (Kp, N) + bias, LeakyReLU, direct store.
    y = jnp.dot(x_ref[...], w_ref[...], preferred_element_type=jnp.float32)
    y = y + b_ref[...]
    o_ref[...] = jnp.where(y >= 0.0, y, negative_slope * y).astype(o_ref.dtype)


def _conv_head_kernel(x_ref, w_ref, b_ref, wh_ref, bh_ref, o_ref, *, negative_slope):
    # Last 3x3 conv (bias + LeakyReLU) fused with the final 1x1 conv head.
    y = jnp.dot(x_ref[...], w_ref[...], preferred_element_type=jnp.float32)
    y = y + b_ref[...]
    y = jnp.where(y >= 0.0, y, negative_slope * y)
    z = jnp.dot(y, wh_ref[...], preferred_element_type=jnp.float32) + bh_ref[...]
    o_ref[...] = z.astype(o_ref.dtype)


def _pad_rows_cols(x, mp, kp):
    m, k = x.shape
    if m == mp and k == kp:
        return x
    return jnp.pad(x, ((0, mp - m), (0, kp - k)))


def _m_tiling(m, tm_max):
    if m <= tm_max:
        return m, m
    tm = tm_max
    return tm, _ceil_to(m, tm)


def conv_matmul(cols, w, b, *, negative_slope=0.01, tm_max=512):
    """LeakyReLU(cols @ w + b). cols:(M,K<=Kp), w:(Kp,N) pre-padded, b:(1,N)."""
    m, k = cols.shape
    kp, n = w.shape
    assert k <= kp and b.shape == (1, n)
    tm, mp = _m_tiling(m, tm_max)
    xp = _pad_rows_cols(cols, mp, kp)

    kernel = functools.partial(_conv_kernel, negative_slope=negative_slope)
    out = pl.pallas_call(
        kernel,
        out_shape=jax.ShapeDtypeStruct((mp, n), jnp.float32),
        grid=(mp // tm,),
        in_specs=[
            pl.BlockSpec((tm, kp), lambda i: (i, 0)),
            pl.BlockSpec((kp, n), lambda i: (0, 0)),   # resident across M tiles
            pl.BlockSpec((1, n), lambda i: (0, 0)),
        ],
        out_specs=pl.BlockSpec((tm, n), lambda i: (i, 0)),
        compiler_params=pltpu.CompilerParams(dimension_semantics=("parallel",)),
    )(xp, w, b)
    return out[:m] if mp != m else out


def conv_head_matmul(cols, w, b, wh, bh, *, negative_slope=0.01, tm_max=512):
    """(LeakyReLU(cols @ w + b)) @ wh + bh — last conv + 1x1 head in one kernel."""
    m, k = cols.shape
    kp, n = w.shape
    nh = wh.shape[1]
    assert k <= kp and wh.shape[0] == n and b.shape == (1, n) and bh.shape == (1, nh)
    tm, mp = _m_tiling(m, tm_max)
    xp = _pad_rows_cols(cols, mp, kp)

    kernel = functools.partial(_conv_head_kernel, negative_slope=negative_slope)
    out = pl.pallas_call(
        kernel,
        out_shape=jax.ShapeDtypeStruct((mp, nh), jnp.float32),
        grid=(mp // tm,),
        in_specs=[
            pl.BlockSpec((tm, kp), lambda i: (i, 0)),
            pl.BlockSpec((kp, n), lambda i: (0, 0)),
            pl.BlockSpec((1, n), lambda i: (0, 0)),
            pl.BlockSpec((n, nh), lambda i: (0, 0)),
            pl.BlockSpec((1, nh), lambda i: (0, 0)),
        ],
        out_specs=pl.BlockSpec((tm, nh), lambda i: (i, 0)),
        compiler_params=pltpu.CompilerParams(dimension_semantics=("parallel",)),
    )(xp, w, b, wh, bh)
    return out[:m] if mp != m else out


# ------------------------------ conv glue ---------------------------------- #
def _reflect_pad_nhwc(x, pad):
    if pad == 0:
        return x
    return jnp.pad(x, ((0, 0), (pad, pad), (pad, pad), (0, 0)), mode="reflect")


def _im2col(x, kh, kw, stride):
    # x: NHWC (already padded). Patch ordering is (kh, kw, C) — matches weight prep.
    n, h, w, c = x.shape
    ho = (h - kh) // stride + 1
    wo = (w - kw) // stride + 1
    cols = []
    for i in range(kh):
        for j in range(kw):
            cols.append(x[:, i:i + stride * ho:stride, j:j + stride * wo:stride, :])
    p = jnp.stack(cols, axis=3)                       # (N, Ho, Wo, kh*kw, C)
    return p.reshape(n * ho * wo, kh * kw * c), (n, ho, wo)


# --------------------------- SSAT_D_makeup model --------------------------- #
def init_dis_params(key, input_dim=3, ch=16, n_layer=4):
    """Raw (PyTorch-layout) weights of networks.Dis: gaussian(0,0.02), zero bias."""
    layer_dims = [(input_dim, ch)]
    tch = ch
    for _ in range(1, n_layer - 1):
        layer_dims.append((tch, tch * 2))
        tch *= 2
    layer_dims.append((tch, tch * 2))
    tch *= 2

    conv_params = []
    for cin, cout in layer_dims:
        key, k1 = jax.random.split(key)
        w = 0.02 * jax.random.normal(k1, (cout, cin, 3, 3), jnp.float32)
        b = jnp.zeros((cout,), jnp.float32)
        conv_params.append((w, b))

    key, k1 = jax.random.split(key)
    w_out = 0.02 * jax.random.normal(k1, (1, tch, 1, 1), jnp.float32)
    b_out = jnp.zeros((1,), jnp.float32)
    return conv_params, (w_out, b_out)


def prepare_params(raw_params):
    """Hoist all weight reshape/transpose/K-padding out of the forward pass."""
    conv_params, (w_out, b_out) = raw_params
    prepped = []
    for w, b in conv_params:
        co, ci, kh, kw = w.shape
        k = kh * kw * ci
        kp = _ceil_to(k, 128)
        # PyTorch (co, ci, kh, kw) -> (kh, kw, ci, co) -> (K, co), matching patch order.
        w2 = jnp.transpose(w, (2, 3, 1, 0)).reshape(k, co)
        w2 = jnp.pad(w2, ((0, kp - k), (0, 0)))
        prepped.append((w2, b.reshape(1, co)))
    # Final 1x1 conv head: (1, tch, 1, 1) -> (tch, 1).
    tch = w_out.shape[1]
    wh = jnp.transpose(w_out, (2, 3, 1, 0)).reshape(tch, 1)
    bh = b_out.reshape(1, 1)
    return prepped, (wh, bh)


def ssat_d_makeup_forward(x_nchw, params):
    conv_ws, (wh, bh) = params
    x = jnp.transpose(x_nchw, (0, 2, 3, 1))            # NCHW -> NHWC
    # LeakyReLUConv2d layers: ReflectionPad(1) + Conv(k3, s2) + LeakyReLU(0.01)
    for w2, b2 in conv_ws[:-1]:
        cols, (n, ho, wo) = _im2col(_reflect_pad_nhwc(x, 1), 3, 3, 2)
        y = conv_matmul(cols, w2, b2)
        x = y.reshape(n, ho, wo, w2.shape[1])
    # Last conv layer fused with the final 1x1 conv (no pad, no activation on head).
    w2, b2 = conv_ws[-1]
    cols, _ = _im2col(_reflect_pad_nhwc(x, 1), 3, 3, 2)
    out = conv_head_matmul(cols, w2, b2, wh, bh)       # (N*Hf*Wf, 1)
    # Rows are (n, h, w)-ordered with a single channel -> equals NCHW out.view(-1).
    return out.reshape(-1)


if __name__ == "__main__":
    key = jax.random.PRNGKey(0)
    kx, kp_ = jax.random.split(key)
    x = jax.random.normal(kx, (2, 3, 32, 32), jnp.float32)   # NCHW, like PyTorch
    raw_params = init_dis_params(kp_, input_dim=3, ch=16, n_layer=4)
    params = prepare_params(raw_params)                      # hoisted weight prep

    fwd = jax.jit(ssat_d_makeup_forward)
    out = fwd(x, params)
    jax.block_until_ready(out)
    assert out.shape == (2 * 1 * 2 * 2,)   # (B * 1 * Hf * Wf,) flattened logits
    print("KERNEL_OK")
</pallas_src>

<mosaic_0001>
module attributes {stable_mosaic.version = 11 : i64} {
  func.func @_conv_kernel(%arg0: i32, %arg1: memref<512x128xf32, #tpu.memory_space<vmem>>, %arg2: memref<128x16xf32, #tpu.memory_space<vmem>>, %arg3: memref<1x16xf32, #tpu.memory_space<vmem>>, %arg4: memref<512x16xf32, #tpu.memory_space<vmem>>) attributes {dimension_semantics = [#tpu.dimension_semantics<parallel>], iteration_bounds = array<i64: 1>, scalar_prefetch = 0 : i64, scratch_operands = 0 : i64, tpu.core_type = #tpu.core_type<tc>, window_params = [{transform_indices = @transform_0, window_bounds = array<i64: 512, 128>}, {pipeline_mode = #tpu.pipeline_mode<synchronous>, transform_indices = @transform_1, window_bounds = array<i64: 128, 16>}, {pipeline_mode = #tpu.pipeline_mode<synchronous>, transform_indices = @transform_2, window_bounds = array<i64: 1, 16>}, {transform_indices = @transform_3, window_bounds = array<i64: 512, 16>}]} {
    %c0 = arith.constant 0 : index
    %c0_0 = arith.constant 0 : index
    %0 = vector.load %arg1[%c0, %c0_0] : memref<512x128xf32, #tpu.memory_space<vmem>>, vector<512x128xf32>
    %c0_1 = arith.constant 0 : index
    %c0_2 = arith.constant 0 : index
    %1 = vector.load %arg2[%c0_1, %c0_2] : memref<128x16xf32, #tpu.memory_space<vmem>>, vector<128x16xf32>
    %cst = arith.constant dense<0.000000e+00> : vector<512x16xf32>
    %2 = tpu.matmul %0, %1, %cst {dimension_numbers = #tpu.dot_dimension_numbers<[1], [0], [0], [1], [0, 0, 1, 1], [], []>} : vector<512x128xf32>, vector<128x16xf32>, vector<512x16xf32> -> vector<512x16xf32>
    %c0_3 = arith.constant 0 : index
    %c0_4 = arith.constant 0 : index
    %3 = vector.load %arg3[%c0_3, %c0_4] : memref<1x16xf32, #tpu.memory_space<vmem>>, vector<1x16xf32>
    %4 = vector.broadcast %3 : vector<1x16xf32> to vector<512x16xf32>
    %5 = arith.addf %2, %4 : vector<512x16xf32>
    %cst_5 = arith.constant 0.000000e+00 : f32
    %6 = vector.broadcast %cst_5 : f32 to vector<512x16xf32>
    %7 = arith.cmpf oge, %5, %6 : vector<512x16xf32>
    %cst_6 = arith.constant 0.00999999977 : f32
    %8 = vector.broadcast %cst_6 : f32 to vector<512x16xf32>
    %9 = arith.mulf %8, %5 : vector<512x16xf32>
    %10 = arith.select %7, %5, %9 : vector<512x16xi1>, vector<512x16xf32>
    %c0_7 = arith.constant 0 : index
    %c0_8 = arith.constant 0 : index
    %11 = vector.load %arg4[%c0_7, %c0_8] : memref<512x16xf32, #tpu.memory_space<vmem>>, vector<512x16xf32>
    tpu.vector_store %arg4[%c0_7, %c0_8], %10 {strides = array<i32>} : memref<512x16xf32, #tpu.memory_space<vmem>>, vector<512x16xf32>,
    return
  }
  func.func @transform_0(%arg0: i32) -> (i32, i32) {
    %c0_i32 = arith.constant 0 : i32
    %c0_i32_0 = arith.constant 0 : i32
    return %arg0, %c0_i32 : i32, i32
  }
  func.func @transform_1(%arg0: i32) -> (i32, i32) {
    %c0_i32 = arith.constant 0 : i32
    %c0_i32_0 = arith.constant 0 : i32
    %c0_i32_1 = arith.constant 0 : i32
    return %c0_i32, %c0_i32_0 : i32, i32
  }
  func.func @transform_2(%arg0: i32) -> (i32, i32) {
    %c0_i32 = arith.constant 0 : i32
    %c0_i32_0 = arith.constant 0 : i32
    %c0_i32_1 = arith.constant 0 : i32
    return %c0_i32, %c0_i32_0 : i32, i32
  }
  func.func @transform_3(%arg0: i32) -> (i32, i32) {
    %c0_i32 = arith.constant 0 : i32
    %c0_i32_0 = arith.constant 0 : i32
    return %arg0, %c0_i32 : i32, i32
  }
}

module attributes {stable_mosaic.version = 11 : i64} {
  func.func @_conv_kernel(%arg0: i32, %arg1: memref<128x256xf32, #tpu.memory_space<vmem>>, %arg2: memref<256x32xf32, #tpu.memory_space<vmem>>, %arg3: memref<1x32xf32, #tpu.memory_space<vmem>>, %arg4: memref<128x32xf32, #tpu.memory_space<vmem>>) attributes {dimension_semantics = [#tpu.dimension_semantics<parallel>], iteration_bounds = array<i64: 1>, scalar_prefetch = 0 : i64, scratch_operands = 0 : i64, tpu.core_type = #tpu.core_type<tc>, window_params = [{transform_indices = @transform_0, window_bounds = array<i64: 128, 256>}, {pipeline_mode = #tpu.pipeline_mode<synchronous>, transform_indices = @transform_1, window_bounds = array<i64: 256, 32>}, {pipeline_mode = #tpu.pipeline_mode<synchronous>, transform_indices = @transform_2, window_bounds = array<i64: 1, 32>}, {transform_indices = @transform_3, window_bounds = array<i64: 128, 32>}]} {
    %c0 = arith.constant 0 : index
    %c0_0 = arith.constant 0 : index
    %0 = vector.load %arg1[%c0, %c0_0] : memref<128x256xf32, #tpu.memory_space<vmem>>, vector<128x256xf32>
    %c0_1 = arith.constant 0 : index
    %c0_2 = arith.constant 0 : index
    %1 = vector.load %arg2[%c0_1, %c0_2] : memref<256x32xf32, #tpu.memory_space<vmem>>, vector<256x32xf32>
    %cst = arith.constant dense<0.000000e+00> : vector<128x32xf32>
    %2 = tpu.matmul %0, %1, %cst {dimension_numbers = #tpu.dot_dimension_numbers<[1], [0], [0], [1], [0, 0, 1, 1], [], []>} : vector<128x256xf32>, vector<256x32xf32>, vector<128x32xf32> -> vector<128x32xf32>
    %c0_3 = arith.constant 0 : index
    %c0_4 = arith.constant 0 : index
    %3 = vector.load %arg3[%c0_3, %c0_4] : memref<1x32xf32, #tpu.memory_space<vmem>>, vector<1x32xf32>
    %4 = vector.broadcast %3 : vector<1x32xf32> to vector<128x32xf32>
    %5 = arith.addf %2, %4 : vector<128x32xf32>
    %cst_5 = arith.constant 0.000000e+00 : f32
    %6 = vector.broadcast %cst_5 : f32 to vector<128x32xf32>
    %7 = arith.cmpf oge, %5, %6 : vector<128x32xf32>
    %cst_6 = arith.constant 0.00999999977 : f32
    %8 = vector.broadcast %cst_6 : f32 to vector<128x32xf32>
    %9 = arith.mulf %8, %5 : vector<128x32xf32>
    %10 = arith.select %7, %5, %9 : vector<128x32xi1>, vector<128x32xf32>
    %c0_7 = arith.constant 0 : index
    %c0_8 = arith.constant 0 : index
    %11 = vector.load %arg4[%c0_7, %c0_8] : memref<128x32xf32, #tpu.memory_space<vmem>>, vector<128x32xf32>
    tpu.vector_store %arg4[%c0_7, %c0_8], %10 {strides = array<i32>} : memref<128x32xf32, #tpu.memory_space<vmem>>, vector<128x32xf32>,
    return
  }
  func.func @transform_0(%arg0: i32) -> (i32, i32) {
    %c0_i32 = arith.constant 0 : i32
    %c0_i32_0 = arith.constant 0 : i32
    return %arg0, %c0_i32 : i32, i32
  }
  func.func @transform_1(%arg0: i32) -> (i32, i32) {
    %c0_i32 = arith.constant 0 : i32
    %c0_i32_0 = arith.constant 0 : i32
    %c0_i32_1 = arith.constant 0 : i32
    return %c0_i32, %c0_i32_0 : i32, i32
  }
  func.func @transform_2(%arg0: i32) -> (i32, i32) {
    %c0_i32 = arith.constant 0 : i32
    %c0_i32_0 = arith.constant 0 : i32
    %c0_i32_1 = arith.constant 0 : i32
    return %c0_i32, %c0_i32_0 : i32, i32
  }
  func.func @transform_3(%arg0: i32) -> (i32, i32) {
    %c0_i32 = arith.constant 0 : i32
    %c0_i32_0 = arith.constant 0 : i32
    return %arg0, %c0_i32 : i32, i32
  }
}

module attributes {stable_mosaic.version = 11 : i64} {
  func.func @_conv_kernel(%arg0: i32, %arg1: memref<32x384xf32, #tpu.memory_space<vmem>>, %arg2: memref<384x64xf32, #tpu.memory_space<vmem>>, %arg3: memref<1x64xf32, #tpu.memory_space<vmem>>, %arg4: memref<32x64xf32, #tpu.memory_space<vmem>>) attributes {dimension_semantics = [#tpu.dimension_semantics<parallel>], iteration_bounds = array<i64: 1>, scalar_prefetch = 0 : i64, scratch_operands = 0 : i64, tpu.core_type = #tpu.core_type<tc>, window_params = [{transform_indices = @transform_0, window_bounds = array<i64: 32, 384>}, {pipeline_mode = #tpu.pipeline_mode<synchronous>, transform_indices = @transform_1, window_bounds = array<i64: 384, 64>}, {pipeline_mode = #tpu.pipeline_mode<synchronous>, transform_indices = @transform_2, window_bounds = array<i64: 1, 64>}, {transform_indices = @transform_3, window_bounds = array<i64: 32, 64>}]} {
    %c0 = arith.constant 0 : index
    %c0_0 = arith.constant 0 : index
    %0 = vector.load %arg1[%c0, %c0_0] : memref<32x384xf32, #tpu.memory_space<vmem>>, vector<32x384xf32>
    %c0_1 = arith.constant 0 : index
    %c0_2 = arith.constant 0 : index
    %1 = vector.load %arg2[%c0_1, %c0_2] : memref<384x64xf32, #tpu.memory_space<vmem>>, vector<384x64xf32>
    %cst = arith.constant dense<0.000000e+00> : vector<32x64xf32>
    %2 = tpu.matmul %0, %1, %cst {dimension_numbers = #tpu.dot_dimension_numbers<[1], [0], [0], [1], [0, 0, 1, 1], [], []>} : vector<32x384xf32>, vector<384x64xf32>, vector<32x64xf32> -> vector<32x64xf32>
    %c0_3 = arith.constant 0 : index
    %c0_4 = arith.constant 0 : index
    %3 = vector.load %arg3[%c0_3, %c0_4] : memref<1x64xf32, #tpu.memory_space<vmem>>, vector<1x64xf32>
    %4 = vector.broadcast %3 : vector<1x64xf32> to vector<32x64xf32>
    %5 = arith.addf %2, %4 : vector<32x64xf32>
    %cst_5 = arith.constant 0.000000e+00 : f32
    %6 = vector.broadcast %cst_5 : f32 to vector<32x64xf32>
    %7 = arith.cmpf oge, %5, %6 : vector<32x64xf32>
    %cst_6 = arith.constant 0.00999999977 : f32
    %8 = vector.broadcast %cst_6 : f32 to vector<32x64xf32>
    %9 = arith.mulf %8, %5 : vector<32x64xf32>
    %10 = arith.select %7, %5, %9 : vector<32x64xi1>, vector<32x64xf32>
    %c0_7 = arith.constant 0 : index
    %c0_8 = arith.constant 0 : index
    %11 = vector.load %arg4[%c0_7, %c0_8] : memref<32x64xf32, #tpu.memory_space<vmem>>, vector<32x64xf32>
    tpu.vector_store %arg4[%c0_7, %c0_8], %10 {strides = array<i32>} : memref<32x64xf32, #tpu.memory_space<vmem>>, vector<32x64xf32>,
    return
  }
  func.func @transform_0(%arg0: i32) -> (i32, i32) {
    %c0_i32 = arith.constant 0 : i32
    %c0_i32_0 = arith.constant 0 : i32
    return %arg0, %c0_i32 : i32, i32
  }
  func.func @transform_1(%arg0: i32) -> (i32, i32) {
    %c0_i32 = arith.constant 0 : i32
    %c0_i32_0 = arith.constant 0 : i32
    %c0_i32_1 = arith.constant 0 : i32
    return %c0_i32, %c0_i32_0 : i32, i32
  }
  func.func @transform_2(%arg0: i32) -> (i32, i32) {
    %c0_i32 = arith.constant 0 : i32
    %c0_i32_0 = arith.constant 0 : i32
    %c0_i32_1 = arith.constant 0 : i32
    return %c0_i32, %c0_i32_0 : i32, i32
  }
  func.func @transform_3(%arg0: i32) -> (i32, i32) {
    %c0_i32 = arith.constant 0 : i32
    %c0_i32_0 = arith.constant 0 : i32
    return %arg0, %c0_i32 : i32, i32
  }
}

module attributes {stable_mosaic.version = 11 : i64} {
  func.func @_conv_head_kernel(%arg0: i32, %arg1: memref<8x640xf32, #tpu.memory_space<vmem>>, %arg2: memref<640x128xf32, #tpu.memory_space<vmem>>, %arg3: memref<1x128xf32, #tpu.memory_space<vmem>>, %arg4: memref<128x1xf32, #tpu.memory_space<vmem>>, %arg5: memref<1x1xf32, #tpu.memory_space<vmem>>, %arg6: memref<8x1xf32, #tpu.memory_space<vmem>>) attributes {dimension_semantics = [#tpu.dimension_semantics<parallel>], iteration_bounds = array<i64: 1>, scalar_prefetch = 0 : i64, scratch_operands = 0 : i64, tpu.core_type = #tpu.core_type<tc>, window_params = [{transform_indices = @transform_0, window_bounds = array<i64: 8, 640>}, {pipeline_mode = #tpu.pipeline_mode<synchronous>, transform_indices = @transform_1, window_bounds = array<i64: 640, 128>}, {pipeline_mode = #tpu.pipeline_mode<synchronous>, transform_indices = @transform_2, window_bounds = array<i64: 1, 128>}, {pipeline_mode = #tpu.pipeline_mode<synchronous>, transform_indices = @transform_3, window_bounds = array<i64: 128, 1>}, {pipeline_mode = #tpu.pipeline_mode<synchronous>, transform_indices = @transform_4, window_bounds = array<i64: 1, 1>}, {transform_indices = @transform_5, window_bounds = array<i64: 8, 1>}]} {
    %c0 = arith.constant 0 : index
    %c0_0 = arith.constant 0 : index
    %0 = vector.load %arg1[%c0, %c0_0] : memref<8x640xf32, #tpu.memory_space<vmem>>, vector<8x640xf32>
    %c0_1 = arith.constant 0 : index
    %c0_2 = arith.constant 0 : index
    %1 = vector.load %arg2[%c0_1, %c0_2] : memref<640x128xf32, #tpu.memory_space<vmem>>, vector<640x128xf32>
    %cst = arith.constant dense<0.000000e+00> : vector<8x128xf32>
    %2 = tpu.matmul %0, %1, %cst {dimension_numbers = #tpu.dot_dimension_numbers<[1], [0], [0], [1], [0, 0, 1, 1], [], []>} : vector<8x640xf32>, vector<640x128xf32>, vector<8x128xf32> -> vector<8x128xf32>
    %c0_3 = arith.constant 0 : index
    %c0_4 = arith.constant 0 : index
    %3 = vector.load %arg3[%c0_3, %c0_4] : memref<1x128xf32, #tpu.memory_space<vmem>>, vector<1x128xf32>
    %4 = vector.broadcast %3 : vector<1x128xf32> to vector<8x128xf32>
    %5 = arith.addf %2, %4 : vector<8x128xf32>
    %cst_5 = arith.constant 0.000000e+00 : f32
    %6 = vector.broadcast %cst_5 : f32 to vector<8x128xf32>
    %7 = arith.cmpf oge, %5, %6 : vector<8x128xf32>
    %cst_6 = arith.constant 0.00999999977 : f32
    %8 = vector.broadcast %cst_6 : f32 to vector<8x128xf32>
    %9 = arith.mulf %8, %5 : vector<8x128xf32>
    %10 = arith.select %7, %5, %9 : vector<8x128xi1>, vector<8x128xf32>
    %c0_7 = arith.constant 0 : index
    %c0_8 = arith.constant 0 : index
    %11 = vector.load %arg4[%c0_7, %c0_8] : memref<128x1xf32, #tpu.memory_space<vmem>>, vector<128x1xf32>
    %cst_9 = arith.constant dense<0.000000e+00> : vector<8x1xf32>
    %12 = tpu.matmul %10, %11, %cst_9 {dimension_numbers = #tpu.dot_dimension_numbers<[1], [0], [0], [1], [0, 0, 1, 1], [], []>} : vector<8x128xf32>, vector<128x1xf32>, vector<8x1xf32> -> vector<8x1xf32>
    %c0_10 = arith.constant 0 : index
    %c0_11 = arith.constant 0 : index
    %13 = vector.load %arg5[%c0_10, %c0_11] : memref<1x1xf32, #tpu.memory_space<vmem>>, vector<1x1xf32>
    %14 = vector.broadcast %13 : vector<1x1xf32> to vector<8x1xf32>
    %15 = arith.addf %12, %14 : vector<8x1xf32>
    %c0_12 = arith.constant 0 : index
    %c0_13 = arith.constant 0 : index
    %16 = vector.load %arg6[%c0_12, %c0_13] : memref<8x1xf32, #tpu.memory_space<vmem>>, vector<8x1xf32>
    tpu.vector_store %arg6[%c0_12, %c0_13], %15 {strides = array<i32>} : memref<8x1xf32, #tpu.memory_space<vmem>>, vector<8x1xf32>,
    return
  }
  func.func @transform_0(%arg0: i32) -> (i32, i32) {
    %c0_i32 = arith.constant 0 : i32
    %c0_i32_0 = arith.constant 0 : i32
    return %arg0, %c0_i32 : i32, i32
  }
  func.func @transform_1(%arg0: i32) -> (i32, i32) {
    %c0_i32 = arith.constant 0 : i32
    %c0_i32_0 = arith.constant 0 : i32
    %c0_i32_1 = arith.constant 0 : i32
    return %c0_i32, %c0_i32_0 : i32, i32
  }
  func.func @transform_2(%arg0: i32) -> (i32, i32) {
    %c0_i32 = arith.constant 0 : i32
    %c0_i32_0 = arith.constant 0 : i32
    %c0_i32_1 = arith.constant 0 : i32
    return %c0_i32, %c0_i32_0 : i32, i32
  }
  func.func @transform_3(%arg0: i32) -> (i32, i32) {
    %c0_i32 = arith.constant 0 : i32
    %c0_i32_0 = arith.constant 0 : i32
    %c0_i32_1 = arith.constant 0 : i32
    return %c0_i32, %c0_i32_0 : i32, i32
  }
  func.func @transform_4(%arg0: i32) -> (i32, i32) {
    %c0_i32 = arith.constant 0 : i32
    %c0_i32_0 = arith.constant 0 : i32
    %c0_i32_1 = arith.constant 0 : i32
    return %c0_i32, %c0_i32_0 : i32, i32
  }
  func.func @transform_5(%arg0: i32) -> (i32, i32) {
    %c0_i32 = arith.constant 0 : i32
    %c0_i32_0 = arith.constant 0 : i32
    return %arg0, %c0_i32 : i32, i32
  }
}

</mosaic_0001>

<bundles_post_ra>
// kernel: ssat_d_makeup_forward.4
= control target key start
LH: loop header
LB: loop body
LE: loop exit
PB: predicated region body
PF: predicated region fallthrough
CT: control target
= control target key end

     0   :  { %vm678_vm0 = vcmask 130048   ;;  %s1589_s1 = inlined_call_operand.vmem [shape: f32[128,16], index: 1, kind: input, shape index: {}]   ;;  %s1590_s0 = inlined_call_operand.vmem [shape: f32[512,128], index: 0, kind: input, shape index: {}]   ;;  %s1591_s2 = inlined_call_operand.vmem [shape: f32[1,16], index: 2, kind: input, shape index: {}]   ;;  %s1592_s3 = inlined_call_operand.vmem [shape: f32[512,16], index: 3, kind: output, shape index: {}]  }
   0x1   :  { %v78_v0 = vld [vmem:[%s1589_s1] sm:$0xff]  ;;  %v79_v1 = vld [vmem:[%s1589_s1 + $0x8] sm:$0xff]  ;;  %v80_v2 = vld [vmem:[%s1589_s1 + $0x10] sm:$0xff] }
   0x2   :  { %v956_v3 = vpack.c.bf16 %v79_v1, %v78_v0  ;;  %v81_v4 = vld [vmem:[%s1589_s1 + $0x18] sm:$0xff]  ;;  %v82_v6 = vld [vmem:[%s1589_s1 + $0x20] sm:$0xff]  ;;  %v83_v7 = vld [vmem:[%s1589_s1 + $0x28] sm:$0xff] }
   0x3   :  { %v960_v5 = vpack.c.bf16 %v81_v4, %v80_v2  ;;  %v964_v8 = vpack.c.bf16 %v83_v7, %v82_v6  ;;  %v14_v9 = vld [vmem:[%s1590_s0] sm:$0xff]  ;;  %v84_v11 = vld [vmem:[%s1589_s1 + $0x30] sm:$0xff]  ;;  %v85_v12 = vld [vmem:[%s1589_s1 + $0x38] sm:$0xff] }
   0x4   :  { %957 = vmatprep.subr.bf16.mxu0 %v956_v3  ;;  %988 = vmatprep.subr.bf16.mxu1 %v956_v3  ;;  %v46_v10 = vld [vmem:[%s1590_s0 + $0x100] sm:$0xff]  ;;  %v968_v13 = vpack.c.bf16 %v85_v12, %v84_v11  ;;  %v87_v15 = vld [vmem:[%s1589_s1 + $0x48] sm:$0xff]  ;;  %v88_v17 = vld [vmem:[%s1589_s1 + $0x50] sm:$0xff] }
   0x5   :  { %959 = vmatpush3.bf16.msra.mxu0 %v956_v3  ;;  %996 = vmatpush3.bf16.msra.mxu1 %v956_v3  ;;  %v86_v14 = vld [vmem:[%s1589_s1 + $0x40] sm:$0xff]  ;;  %v89_v18 = vld [vmem:[%s1589_s1 + $0x58] sm:$0xff]  ;;  %v91_v21 = vld [vmem:[%s1589_s1 + $0x68] sm:$0xff] }
   0x6   :  { %961 = vmatprep.subr.bf16.mxu0 %v960_v5  ;;  %989 = vmatprep.subr.bf16.mxu1 %v960_v5  ;;  %v972_v16 = vpack.c.bf16 %v87_v15, %v86_v14  ;;  %v976_v19 = vpack.c.bf16 %v89_v18, %v88_v17  ;;  %v90_v20 = vld [vmem:[%s1589_s1 + $0x60] sm:$0xff]  ;;  %v92_v23 = vld [vmem:[%s1589_s1 + $0x70] sm:$0xff]  ;;  %v93_v24 = vld [vmem:[%s1589_s1 + $0x78] sm:$0xff] }
   0x7   :  { %860 = vmatprep.mubr.f32.mxu0 %v14_v9  ;;  %908 = vmatprep.mubr.f32.mxu1 %v46_v10  ;;  %v980_v22 = vpack.c.bf16 %v91_v21, %v90_v20  ;;  %v984_v25 = vpack.c.bf16 %v93_v24, %v92_v23  ;;  %v15_v26 = vld [vmem:[%s1590_s0 + $0x8] sm:$0xff]  ;;  %v16_v28 = vld [vmem:[%s1590_s0 + $0x10] sm:$0xff]  ;;  %v17_v30 = vld [vmem:[%s1590_s0 + $0x18] sm:$0xff] }
   0x8   :  { %v47_v27 = vld [vmem:[%s1590_s0 + $0x108] sm:$0xff]  ;;  %v48_v29 = vld [vmem:[%s1590_s0 + $0x110] sm:$0xff]  ;;  %v49_v31 = vld [vmem:[%s1590_s0 + $0x118] sm:$0xff] }
   0x9   :  { %963 = vmatpush3.bf16.msra.mxu0 %v960_v5  ;;  %997 = vmatpush3.bf16.msra.mxu1 %v960_v5  ;;  %v18_v32 = vld [vmem:[%s1590_s0 + $0x20] sm:$0xff]  ;;  %v19_v34 = vld [vmem:[%s1590_s0 + $0x28] sm:$0xff]  ;;  %v20_v36 = vld [vmem:[%s1590_s0 + $0x30] sm:$0xff] }
   0xa   :  { %965 = vmatprep.subr.bf16.mxu0 %v964_v8  ;;  %990 = vmatprep.subr.bf16.mxu1 %v964_v8  ;;  %v50_v33 = vld [vmem:[%s1590_s0 + $0x120] sm:$0xff]  ;;  %v51_v35 = vld [vmem:[%s1590_s0 + $0x128] sm:$0xff]  ;;  %v52_v37 = vld [vmem:[%s1590_s0 + $0x130] sm:$0xff] }
   0xb   :  { %v21_v38 = vld [vmem:[%s1590_s0 + $0x38] sm:$0xff]  ;;  %v22_v40 = vld [vmem:[%s1590_s0 + $0x40] sm:$0xff]  ;;  %v23_v42 = vld [vmem:[%s1590_s0 + $0x48] sm:$0xff] }
   0xc   :  { %v53_v39 = vld [vmem:[%s1590_s0 + $0x138] sm:$0xff]  ;;  %v54_v41 = vld [vmem:[%s1590_s0 + $0x140] sm:$0xff]  ;;  %v55_v43 = vld [vmem:[%s1590_s0 + $0x148] sm:$0xff] }
   0xd   :  { %967 = vmatpush3.bf16.msra.mxu0 %v964_v8  ;;  %998 = vmatpush3.bf16.msra.mxu1 %v964_v8  ;;  %v24_v44 = vld [vmem:[%s1590_s0 + $0x50] sm:$0xff]  ;;  %v25_v46 = vld [vmem:[%s1590_s0 + $0x58] sm:$0xff]  ;;  %v26_v48 = vld [vmem:[%s1590_s0 + $0x60] sm:$0xff] }
   0xe   :  { %969 = vmatprep.subr.bf16.mxu0 %v968_v13  ;;  %991 = vmatprep.subr.bf16.mxu1 %v968_v13  ;;  %v56_v45 = vld [vmem:[%s1590_s0 + $0x150] sm:$0xff]  ;;  %v57_v47 = vld [vmem:[%s1590_s0 + $0x158] sm:$0xff]  ;;  %v58_v49 = vld [vmem:[%s1590_s0 + $0x160] sm:$0xff] }
   0xf   :  { %v27_v50 = vld [vmem:[%s1590_s0 + $0x68] sm:$0xff]  ;;  %v28_v52 = vld [vmem:[%s1590_s0 + $0x70] sm:$0xff]  ;;  %v29_v54 = vld [vmem:[%s1590_s0 + $0x78] sm:$0xff] }
  0x10   :  { %v59_v51 = vld [vmem:[%s1590_s0 + $0x168] sm:$0xff]  ;;  %v60_v53 = vld [vmem:[%s1590_s0 + $0x170] sm:$0xff]  ;;  %v61_v55 = vld [vmem:[%s1590_s0 + $0x178] sm:$0xff] }
  0x11   :  { %971 = vmatpush3.bf16.msra.mxu0 %v968_v13  ;;  %999 = vmatpush3.bf16.msra.mxu1 %v968_v13  ;;  %v30_v56 = vld [vmem:[%s1590_s0 + $0x80] sm:$0xff]  ;;  %v31_v58 = vld [vmem:[%s1590_s0 + $0x88] sm:$0xff]  ;;  %v32_v60 = vld [vmem:[%s1590_s0 + $0x90] sm:$0xff] }
  0x12   :  { %973 = vmatprep.subr.bf16.mxu0 %v972_v16  ;;  %992 = vmatprep.subr.bf16.mxu1 %v972_v16  ;;  %v62_v57 = vld [vmem:[%s1590_s0 + $0x180] sm:$0xff]  ;;  %v63_v59 = vld [vmem:[%s1590_s0 + $0x188] sm:$0xff]  ;;  %v64_v61 = vld [vmem:[%s1590_s0 + $0x190] sm:$0xff] }
  0x13   :  { %v33_v62 = vld [vmem:[%s1590_s0 + $0x98] sm:$0xff]  ;;  %v34_v0 = vld [vmem:[%s1590_s0 + $0xa0] sm:$0xff]  ;;  %v35_v2 = vld [vmem:[%s1590_s0 + $0xa8] sm:$0xff] }
  0x14   :  { %v65_v63 = vld [vmem:[%s1590_s0 + $0x198] sm:$0xff]  ;;  %v66_v1 = vld [vmem:[%s1590_s0 + $0x1a0] sm:$0xff]  ;;  %v67_v3 = vld [vmem:[%s1590_s0 + $0x1a8] sm:$0xff] }
  0x15   :  { %975 = vmatpush3.bf16.msra.mxu0 %v972_v16  ;;  %1000 = vmatpush3.bf16.msra.mxu1 %v972_v16  ;;  %v36_v4 = vld [vmem:[%s1590_s0 + $0xb0] sm:$0xff]  ;;  %v37_v6 = vld [vmem:[%s1590_s0 + $0xb8] sm:$0xff]  ;;  %v38_v8 = vld [vmem:[%s1590_s0 + $0xc0] sm:$0xff] }
  0x16   :  { %977 = vmatprep.subr.bf16.mxu0 %v976_v19  ;;  %993 = vmatprep.subr.bf16.mxu1 %v976_v19  ;;  %v68_v5 = vld [vmem:[%s1590_s0 + $0x1b0] sm:$0xff]  ;;  %v69_v7 = vld [vmem:[%s1590_s0 + $0x1b8] sm:$0xff]  ;;  %v70_v9 = vld [vmem:[%s1590_s0 + $0x1c0] sm:$0xff] }
  0x17   :  { %v39_v10 = vld [vmem:[%s1590_s0 + $0xc8] sm:$0xff]  ;;  %v40_v12 = vld [vmem:[%s1590_s0 + $0xd0] sm:$0xff]  ;;  %v41_v14 = vld [vmem:[%s1590_s0 + $0xd8] sm:$0xff] }
  0x18   :  { %v71_v11 = vld [vmem:[%s1590_s0 + $0x1c8] sm:$0xff]  ;;  %v72_v13 = vld [vmem:[%s1590_s0 + $0x1d0] sm:$0xff]  ;;  %v73_v15 = vld [vmem:[%s1590_s0 + $0x1d8] sm:$0xff] }
  0x19   :  { %979 = vmatpush3.bf16.msra.mxu0 %v976_v19  ;;  %1001 = vmatpush3.bf16.msra.mxu1 %v976_v19  ;;  %v42_v16 = vld [vmem:[%s1590_s0 + $0xe0] sm:$0xff]  ;;  %v43_v18 = vld [vmem:[%s1590_s0 + $0xe8] sm:$0xff]  ;;  %v44_v20 = vld [vmem:[%s1590_s0 + $0xf0] sm:$0xff] }
  0x1a   :  { %981 = vmatprep.subr.bf16.mxu0 %v980_v22  ;;  %994 = vmatprep.subr.bf16.mxu1 %v980_v22  ;;  %v74_v17 = vld [vmem:[%s1590_s0 + $0x1e0] sm:$0xff]  ;;  %v75_v19 = vld [vmem:[%s1590_s0 + $0x1e8] sm:$0xff]  ;;  %v76_v21 = vld [vmem:[%s1590_s0 + $0x1f0] sm:$0xff] }
  0x1b   :  { %v77_v23 = vld [vmem:[%s1590_s0 + $0x1f8] sm:$0xff]  ;;  %v1267_v24 = vld [vmem:[%s1591_s2] ss:$0 sm:$0xff] }
  0x1d   :  { %983 = vmatpush3.bf16.msra.mxu0 %v980_v22  ;;  %1002 = vmatpush3.bf16.msra.mxu1 %v980_v22  ;;  %v45_v22 = vld [vmem:[%s1590_s0 + $0xf8] sm:$0xff] }
  0x1e   :  { %985 = vmatprep.subr.bf16.mxu0 %v984_v25  ;;  %995 = vmatprep.subr.bf16.mxu1 %v984_v25 }
  0x21   :  { %987 = vmatpush3.bf16.msra.mxu0 %v984_v25  ;;  %1003 = vmatpush3.bf16.msra.mxu1 %v984_v25 }
  0x24   :  { %861 = vmatmul.mubr.f32.vlgmr.msra.gmra.mrb[0].mxu0 %v15_v26  ;;  %909 = vmatmul.mubr.f32.vlgmr.msra.gmra.mrb[0].mxu1 %v47_v27 }
  0x25   :  { %863 = vmatprep.mubr.f32.mxu0 %v16_v28  ;;  %911 = vmatprep.mubr.f32.mxu1 %v48_v29 }
  0x28   :  { %864 = vmatmul.mubr.f32.gmra.mrb[2].mxu0 %v17_v30  ;;  %912 = vmatmul.mubr.f32.gmra.mrb[2].mxu1 %v49_v31 }
  0x29   :  { %866 = vmatprep.mubr.f32.mxu0 %v18_v32  ;;  %914 = vmatprep.mubr.f32.mxu1 %v50_v33 }
  0x2c   :  { %867 = vmatmul.mubr.f32.gmra.mrb[4].mxu0 %v19_v34  ;;  %915 = vmatmul.mubr.f32.gmra.mrb[4].mxu1 %v51_v35 }
  0x2d   :  { %869 = vmatprep.mubr.f32.mxu0 %v20_v36  ;;  %917 = vmatprep.mubr.f32.mxu1 %v52_v37 }
  0x30   :  { %870 = vmatmul.mubr.f32.gmra.mrb[6].mxu0 %v21_v38  ;;  %918 = vmatmul.mubr.f32.gmra.mrb[6].mxu1 %v53_v39 }
  0x31   :  { %872 = vmatprep.mubr.f32.mxu0 %v22_v40  ;;  %920 = vmatprep.mubr.f32.mxu1 %v54_v41 }
  0x34   :  { %873 = vmatmul.mubr.f32.gmra.mrb[8].mxu0 %v23_v42  ;;  %921 = vmatmul.mubr.f32.gmra.mrb[8].mxu1 %v55_v43 }
  0x35   :  { %875 = vmatprep.mubr.f32.mxu0 %v24_v44  ;;  %923 = vmatprep.mubr.f32.mxu1 %v56_v45 }
  0x38   :  { %876 = vmatmul.mubr.f32.gmra.mrb[10].mxu0 %v25_v46  ;;  %924 = vmatmul.mubr.f32.gmra.mrb[10].mxu1 %v57_v47 }
  0x39   :  { %878 = vmatprep.mubr.f32.mxu0 %v26_v48  ;;  %926 = vmatprep.mubr.f32.mxu1 %v58_v49 }
  0x3c   :  { %879 = vmatmul.mubr.f32.gmra.mrb[12].mxu0 %v27_v50  ;;  %927 = vmatmul.mubr.f32.gmra.mrb[12].mxu1 %v59_v51 }
  0x3d   :  { %881 = vmatprep.mubr.f32.mxu0 %v28_v52  ;;  %929 = vmatprep.mubr.f32.mxu1 %v60_v53 }
  0x40   :  { %882 = vmatmul.mubr.f32.gmra.mrb[14].mxu0 %v29_v54  ;;  %930 = vmatmul.mubr.f32.gmra.mrb[14].mxu1 %v61_v55 }
  0x41   :  { %884 = vmatprep.mubr.f32.mxu0 %v30_v56  ;;  %932 = vmatprep.mubr.f32.mxu1 %v62_v57 }
  0x44   :  { %885 = vmatmul.mubr.f32.gmra.mrb[16].mxu0 %v31_v58  ;;  %933 = vmatmul.mubr.f32.gmra.mrb[16].mxu1 %v63_v59 }
  0x45   :  { %887 = vmatprep.mubr.f32.mxu0 %v32_v60  ;;  %935 = vmatprep.mubr.f32.mxu1 %v64_v61 }
  0x48   :  { %888 = vmatmul.mubr.f32.gmra.mrb[18].mxu0 %v33_v62  ;;  %936 = vmatmul.mubr.f32.gmra.mrb[18].mxu1 %v65_v63 }
  0x49   :  { %890 = vmatprep.mubr.f32.mxu0 %v34_v0  ;;  %938 = vmatprep.mubr.f32.mxu1 %v66_v1 }
  0x4c   :  { %891 = vmatmul.mubr.f32.gmra.mrb[20].mxu0 %v35_v2  ;;  %939 = vmatmul.mubr.f32.gmra.mrb[20].mxu1 %v67_v3 }
  0x4d   :  { %893 = vmatprep.mubr.f32.mxu0 %v36_v4  ;;  %941 = vmatprep.mubr.f32.mxu1 %v68_v5 }
  0x50   :  { %894 = vmatmul.mubr.f32.gmra.mrb[22].mxu0 %v37_v6  ;;  %942 = vmatmul.mubr.f32.gmra.mrb[22].mxu1 %v69_v7 }
  0x51   :  { %896 = vmatprep.mubr.f32.mxu0 %v38_v8  ;;  %944 = vmatprep.mubr.f32.mxu1 %v70_v9 }
  0x54   :  { %897 = vmatmul.mubr.f32.gmra.mrb[24].mxu0 %v39_v10  ;;  %945 = vmatmul.mubr.f32.gmra.mrb[24].mxu1 %v71_v11 }
  0x55   :  { %899 = vmatprep.mubr.f32.mxu0 %v40_v12  ;;  %947 = vmatprep.mubr.f32.mxu1 %v72_v13 }
  0x58   :  { %900 = vmatmul.mubr.f32.gmra.mrb[26].mxu0 %v41_v14  ;;  %948 = vmatmul.mubr.f32.gmra.mrb[26].mxu1 %v73_v15 }
  0x59   :  { %902 = vmatprep.mubr.f32.mxu0 %v42_v16  ;;  %950 = vmatprep.mubr.f32.mxu1 %v74_v17 }
  0x5c   :  { %903 = vmatmul.mubr.f32.gmra.mrb[28].mxu0 %v43_v18  ;;  %951 = vmatmul.mubr.f32.gmra.mrb[28].mxu1 %v75_v19 }
  0x5d   :  { %905 = vmatprep.mubr.f32.mxu0 %v44_v20  ;;  %953 = vmatprep.mubr.f32.mxu1 %v76_v21 }
  0x60   :  { %906 = vmatmul.mubr.f32.gmra.mrb[30].mxu0 %v45_v22  ;;  %954 = vmatmul.mubr.f32.gmra.mrb[30].mxu1 %v77_v23 }
  0xf7   :  { %v862_v25 = vpop.f32.mrb[0].mxu0  ;;  %v910_v26 = vpop.f32.mrb[0].mxu1 }
  0xf8   :  { %v173_v27 = vadd.f32 %v862_v25, %v1267_v24  ;;  %v333_v28 = vadd.f32 %v910_v26, %v1267_v24  ;;  %v167_v29 = vpop.f32.mrb[1].mxu0  ;;  %v327_v30 = vpop.f32.mrb[1].mxu1 }
  0xf9   :  { %v168_v31 = vadd.f32 %v1267_v24, %v167_v29  ;;  %v328_v32 = vadd.f32 %v1267_v24, %v327_v30 }
  0xfa   :  { %vm487_vm1 = vcmp.ge.f32.partialorder %v173_v27, 0.0  ;;  %v551_v33 = vmul.f32 0.01, %v173_v27  ;;  %vm519_vm2 = vcmp.ge.f32.partialorder %v333_v28, 0.0  ;;  %v583_v34 = vmul.f32 0.01, %v333_v28 }
  0xfb   :  { %vm486_vm3 = vcmp.ge.f32.partialorder %v168_v31, 0.0  ;;  %v550_v35 = vmul.f32 0.01, %v168_v31  ;;  %vm518_vm4 = vcmp.ge.f32.partialorder %v328_v32, 0.0  ;;  %v582_v36 = vmul.f32 0.01, %v328_v32 }
  0xfc   :  { %v615_v37 = vsel %vm487_vm1, %v173_v27, %v551_v33  ;;  %v647_v38 = vsel %vm519_vm2, %v333_v28, %v583_v34  ;;  %v865_v39 = vpop.f32.mrb[2].mxu0  ;;  %v913_v40 = vpop.f32.mrb[2].mxu1 }
  0xfd   :  { %680 = vst.msk [vmem:[%s1592_s3 + $0x8] sm:$0xff] %vm678_vm0, %v615_v37  ;;  %712 = vst.msk [vmem:[%s1592_s3 + $0x108] sm:$0xff] %vm678_vm0, %v647_v38  ;;  %v614_v41 = vsel %vm486_vm3, %v168_v31, %v550_v35  ;;  %v646_v42 = vsel %vm518_vm4, %v328_v32, %v582_v36  ;;  %v183_v43 = vadd.f32 %v865_v39, %v1267_v24  ;;  %v177_v45 = vpop.f32.mrb[3].mxu0  ;;  %v337_v46 = vpop.f32.mrb[3].mxu1 }
  0xfe   :  { %v343_v44 = vadd.f32 %v913_v40, %v1267_v24  ;;  %679 = vst.msk [vmem:[%s1592_s3] sm:$0xff] %vm678_vm0, %v614_v41  ;;  %711 = vst.msk [vmem:[%s1592_s3 + $0x100] sm:$0xff] %vm678_vm0, %v646_v42  ;;  %v178_v47 = vadd.f32 %v1267_v24, %v177_v45  ;;  %v338_v48 = vadd.f32 %v1267_v24, %v337_v46 }
  0xff   :  { %vm489_vm5 = vcmp.ge.f32.partialorder %v183_v43, 0.0  ;;  %v553_v49 = vmul.f32 0.01, %v183_v43  ;;  %v868_v55 = vpop.f32.mrb[4].mxu0  ;;  %v916_v56 = vpop.f32.mrb[4].mxu1 }
 0x100   :  { %vm521_vm6 = vcmp.ge.f32.partialorder %v343_v44, 0.0  ;;  %v585_v50 = vmul.f32 0.01, %v343_v44  ;;  %vm488_vm7 = vcmp.ge.f32.partialorder %v178_v47, 0.0  ;;  %v552_v51 = vmul.f32 0.01, %v178_v47 }
 0x101   :  { %vm520_vm8 = vcmp.ge.f32.partialorder %v338_v48, 0.0  ;;  %v584_v52 = vmul.f32 0.01, %v338_v48  ;;  %v617_v53 = vsel %vm489_vm5, %v183_v43, %v553_v49  ;;  %v193_v59 = vadd.f32 %v868_v55, %v1267_v24  ;;  %v187_v61 = vpop.f32.mrb[5].mxu0  ;;  %v347_v62 = vpop.f32.mrb[5].mxu1 }
 0x102   :  { %v649_v54 = vsel %vm521_vm6, %v343_v44, %v585_v50  ;;  %682 = vst.msk [vmem:[%s1592_s3 + $0x18] sm:$0xff] %vm678_vm0, %v617_v53  ;;  %v616_v57 = vsel %vm488_vm7, %v178_v47, %v552_v51  ;;  %v353_v60 = vadd.f32 %v916_v56, %v1267_v24  ;;  %v188_v63 = vadd.f32 %v1267_v24, %v187_v61 }
 0x103   :  { %714 = vst.msk [vmem:[%s1592_s3 + $0x118] sm:$0xff] %vm678_vm0, %v649_v54  ;;  %v648_v58 = vsel %vm520_vm8, %v338_v48, %v584_v52  ;;  %681 = vst.msk [vmem:[%s1592_s3 + $0x10] sm:$0xff] %vm678_vm0, %v616_v57  ;;  %v348_v0 = vadd.f32 %v1267_v24, %v347_v62  ;;  %v871_v1 = vpop.f32.mrb[6].mxu0  ;;  %v919_v2 = vpop.f32.mrb[6].mxu1  ;;  %vm491_vm9 = vcmp.ge.f32.partialorder %v193_v59, 0.0 }
 0x104   :  { %713 = vst.msk [vmem:[%s1592_s3 + $0x110] sm:$0xff] %vm678_vm0, %v648_v58  ;;  %v555_v3 = vmul.f32 0.01, %v193_v59  ;;  %vm523_vm10 = vcmp.ge.f32.partialorder %v353_v60, 0.0  ;;  %v587_v4 = vmul.f32 0.01, %v353_v60  ;;  %v203_v9 = vadd.f32 %v871_v1, %v1267_v24 }
 0x105   :  { %vm490_vm11 = vcmp.ge.f32.partialorder %v188_v63, 0.0  ;;  %v554_v5 = vmul.f32 0.01, %v188_v63  ;;  %vm522_vm12 = vcmp.ge.f32.partialorder %v348_v0, 0.0  ;;  %v586_v6 = vmul.f32 0.01, %v348_v0 }
 0x106   :  { %v619_v7 = vsel %vm491_vm9, %v193_v59, %v555_v3  ;;  %v651_v8 = vsel %vm523_vm10, %v353_v60, %v587_v4  ;;  %v363_v10 = vadd.f32 %v919_v2, %v1267_v24  ;;  %v197_v11 = vpop.f32.mrb[7].mxu0  ;;  %v357_v12 = vpop.f32.mrb[7].mxu1  ;;  %vm493_vm13 = vcmp.ge.f32.partialorder %v203_v9, 0.0 }
 0x107   :  { %684 = vst.msk [vmem:[%s1592_s3 + $0x28] sm:$0xff] %vm678_vm0, %v619_v7  ;;  %716 = vst.msk [vmem:[%s1592_s3 + $0x128] sm:$0xff] %vm678_vm0, %v651_v8  ;;  %v618_v13 = vsel %vm490_vm11, %v188_v63, %v554_v5  ;;  %v650_v14 = vsel %vm522_vm12, %v348_v0, %v586_v6  ;;  %v198_v15 = vadd.f32 %v1267_v24, %v197_v11  ;;  %v874_v17 = vpop.f32.mrb[8].mxu0  ;;  %v922_v18 = vpop.f32.mrb[8].mxu1  ;;  %v557_v19 = vmul.f32 0.01, %v203_v9 }
 0x108   :  { %v358_v16 = vadd.f32 %v1267_v24, %v357_v12  ;;  %683 = vst.msk [vmem:[%s1592_s3 + $0x20] sm:$0xff] %vm678_vm0, %v618_v13  ;;  %715 = vst.msk [vmem:[%s1592_s3 + $0x120] sm:$0xff] %vm678_vm0, %v650_v14  ;;  %vm525_vm14 = vcmp.ge.f32.partialorder %v363_v10, 0.0  ;;  %v589_v20 = vmul.f32 0.01, %v363_v10  ;;  %v213_v26 = vadd.f32 %v874_v17, %v1267_v24  ;;  %v207_v28 = vpop.f32.mrb[9].mxu0 }
 0x109   :  { %vm492_vm15 = vcmp.ge.f32.partialorder %v198_v15, 0.0  ;;  %v556_v21 = vmul.f32 0.01, %v198_v15  ;;  %v621_v23 = vsel %vm493_vm13, %v203_v9, %v557_v19  ;;  %v373_v27 = vadd.f32 %v922_v18, %v1267_v24  ;;  %v367_v29 = vpop.f32.mrb[9].mxu1 }
 0x10a   :  { %vm524_vm1 = vcmp.ge.f32.partialorder %v358_v16, 0.0  ;;  %v588_v22 = vmul.f32 0.01, %v358_v16  ;;  %v653_v25 = vsel %vm525_vm14, %v363_v10, %v589_v20  ;;  %686 = vst.msk [vmem:[%s1592_s3 + $0x38] sm:$0xff] %vm678_vm0, %v621_v23  ;;  %v208_v32 = vadd.f32 %v1267_v24, %v207_v28 }
 0x10b   :  { %718 = vst.msk [vmem:[%s1592_s3 + $0x138] sm:$0xff] %vm678_vm0, %v653_v25  ;;  %v620_v30 = vsel %vm492_vm15, %v198_v15, %v556_v21  ;;  %v368_v33 = vadd.f32 %v1267_v24, %v367_v29  ;;  %v877_v34 = vpop.f32.mrb[10].mxu0  ;;  %v925_v35 = vpop.f32.mrb[10].mxu1  ;;  %vm495_vm2 = vcmp.ge.f32.partialorder %v213_v26, 0.0  ;;  %v559_v36 = vmul.f32 0.01, %v213_v26 }
 0x10c   :  { %v652_v31 = vsel %vm524_vm1, %v358_v16, %v588_v22  ;;  %685 = vst.msk [vmem:[%s1592_s3 + $0x30] sm:$0xff] %vm678_vm0, %v620_v30  ;;  %vm527_vm3 = vcmp.ge.f32.partialorder %v373_v27, 0.0  ;;  %v591_v37 = vmul.f32 0.01, %v373_v27  ;;  %vm494_vm4 = vcmp.ge.f32.partialorder %v208_v32, 0.0  ;;  %v217_v44 = vpop.f32.mrb[11].mxu0 }
 0x10d   :  { %717 = vst.msk [vmem:[%s1592_s3 + $0x130] sm:$0xff] %vm678_vm0, %v652_v31  ;;  %v558_v38 = vmul.f32 0.01, %v208_v32  ;;  %vm526_vm5 = vcmp.ge.f32.partialorder %v368_v33, 0.0  ;;  %v590_v39 = vmul.f32 0.01, %v368_v33  ;;  %v623_v40 = vsel %vm495_vm2, %v213_v26, %v559_v36 }
 0x10e   :  { %v655_v41 = vsel %vm527_vm3, %v373_v27, %v591_v37  ;;  %v223_v42 = vadd.f32 %v877_v34, %v1267_v24  ;;  %v383_v43 = vadd.f32 %v925_v35, %v1267_v24  ;;  %v377_v45 = vpop.f32.mrb[11].mxu1  ;;  %688 = vst.msk [vmem:[%s1592_s3 + $0x48] sm:$0xff] %vm678_vm0, %v623_v40  ;;  %v218_v48 = vadd.f32 %v1267_v24, %v217_v44 }
 0x10f   :  { %720 = vst.msk [vmem:[%s1592_s3 + $0x148] sm:$0xff] %vm678_vm0, %v655_v41  ;;  %v622_v46 = vsel %vm494_vm4, %v208_v32, %v558_v38  ;;  %v654_v47 = vsel %vm526_vm5, %v368_v33, %v590_v39  ;;  %v378_v49 = vadd.f32 %v1267_v24, %v377_v45  ;;  %v880_v50 = vpop.f32.mrb[12].mxu0  ;;  %v928_v51 = vpop.f32.mrb[12].mxu1 }
 0x110   :  { %687 = vst.msk [vmem:[%s1592_s3 + $0x40] sm:$0xff] %vm678_vm0, %v622_v46  ;;  %719 = vst.msk [vmem:[%s1592_s3 + $0x140] sm:$0xff] %vm678_vm0, %v654_v47  ;;  %vm497_vm6 = vcmp.ge.f32.partialorder %v223_v42, 0.0  ;;  %v561_v52 = vmul.f32 0.01, %v223_v42  ;;  %vm529_vm7 = vcmp.ge.f32.partialorder %v383_v43, 0.0  ;;  %v233_v58 = vadd.f32 %v880_v50, %v1267_v24 }
 0x111   :  { %v593_v53 = vmul.f32 0.01, %v383_v43  ;;  %vm496_vm8 = vcmp.ge.f32.partialorder %v218_v48, 0.0  ;;  %v560_v54 = vmul.f32 0.01, %v218_v48  ;;  %vm528_vm9 = vcmp.ge.f32.partialorder %v378_v49, 0.0 }
 0x112   :  { %v592_v55 = vmul.f32 0.01, %v378_v49  ;;  %v625_v56 = vsel %vm497_vm6, %v223_v42, %v561_v52  ;;  %v393_v59 = vadd.f32 %v928_v51, %v1267_v24  ;;  %v227_v60 = vpop.f32.mrb[13].mxu0  ;;  %v387_v61 = vpop.f32.mrb[13].mxu1  ;;  %vm499_vm10 = vcmp.ge.f32.partialorder %v233_v58, 0.0 }
 0x113   :  { %v657_v57 = vsel %vm529_vm7, %v383_v43, %v593_v53  ;;  %690 = vst.msk [vmem:[%s1592_s3 + $0x58] sm:$0xff] %vm678_vm0, %v625_v56  ;;  %v624_v62 = vsel %vm496_vm8, %v218_v48, %v560_v54  ;;  %v228_v0 = vadd.f32 %v1267_v24, %v227_v60  ;;  %v388_v1 = vadd.f32 %v1267_v24, %v387_v61  ;;  %v883_v2 = vpop.f32.mrb[14].mxu0  ;;  %v931_v3 = vpop.f32.mrb[14].mxu1 }
 0x114   :  { %722 = vst.msk [vmem:[%s1592_s3 + $0x158] sm:$0xff] %vm678_vm0, %v657_v57  ;;  %v656_v63 = vsel %vm528_vm9, %v378_v49, %v592_v55  ;;  %689 = vst.msk [vmem:[%s1592_s3 + $0x50] sm:$0xff] %vm678_vm0, %v624_v62  ;;  %v563_v4 = vmul.f32 0.01, %v233_v58  ;;  %vm531_vm11 = vcmp.ge.f32.partialorder %v393_v59, 0.0  ;;  %v243_v10 = vadd.f32 %v883_v2, %v1267_v24  ;;  %v237_v12 = vpop.f32.mrb[15].mxu0 }
 0x115   :  { %721 = vst.msk [vmem:[%s1592_s3 + $0x150] sm:$0xff] %vm678_vm0, %v656_v63  ;;  %v595_v5 = vmul.f32 0.01, %v393_v59  ;;  %vm498_vm12 = vcmp.ge.f32.partialorder %v228_v0, 0.0  ;;  %v562_v6 = vmul.f32 0.01, %v228_v0  ;;  %v403_v11 = vadd.f32 %v931_v3, %v1267_v24 }
 0x116   :  { %vm530_vm13 = vcmp.ge.f32.partialorder %v388_v1, 0.0  ;;  %v594_v7 = vmul.f32 0.01, %v388_v1  ;;  %v627_v8 = vsel %vm499_vm10, %v233_v58, %v563_v4  ;;  %v397_v13 = vpop.f32.mrb[15].mxu1  ;;  %v238_v16 = vadd.f32 %v1267_v24, %v237_v12 }
 0x117   :  { %v659_v9 = vsel %vm531_vm11, %v393_v59, %v595_v5  ;;  %692 = vst.msk [vmem:[%s1592_s3 + $0x68] sm:$0xff] %vm678_vm0, %v627_v8  ;;  %v626_v14 = vsel %vm498_vm12, %v228_v0, %v562_v6  ;;  %v398_v17 = vadd.f32 %v1267_v24, %v397_v13  ;;  %v886_v18 = vpop.f32.mrb[16].mxu0  ;;  %v934_v19 = vpop.f32.mrb[16].mxu1  ;;  %vm501_vm14 = vcmp.ge.f32.partialorder %v243_v10, 0.0 }
 0x118   :  { %724 = vst.msk [vmem:[%s1592_s3 + $0x168] sm:$0xff] %vm678_vm0, %v659_v9  ;;  %v658_v15 = vsel %vm530_vm13, %v388_v1, %v594_v7  ;;  %691 = vst.msk [vmem:[%s1592_s3 + $0x60] sm:$0xff] %vm678_vm0, %v626_v14  ;;  %v565_v20 = vmul.f32 0.01, %v243_v10  ;;  %vm533_vm15 = vcmp.ge.f32.partialorder %v403_v11, 0.0  ;;  %vm500_vm1 = vcmp.ge.f32.partialorder %v238_v16, 0.0 }
 0x119   :  { %723 = vst.msk [vmem:[%s1592_s3 + $0x160] sm:$0xff] %vm678_vm0, %v658_v15  ;;  %v597_v21 = vmul.f32 0.01, %v403_v11  ;;  %v564_v22 = vmul.f32 0.01, %v238_v16  ;;  %vm532_vm2 = vcmp.ge.f32.partialorder %v398_v17, 0.0  ;;  %v253_v27 = vadd.f32 %v886_v18, %v1267_v24 }
 0x11a   :  { %v596_v23 = vmul.f32 0.01, %v398_v17  ;;  %v629_v25 = vsel %vm501_vm14, %v243_v10, %v565_v20  ;;  %v413_v28 = vadd.f32 %v934_v19, %v1267_v24  ;;  %v247_v29 = vpop.f32.mrb[17].mxu0  ;;  %v407_v30 = vpop.f32.mrb[17].mxu1 }
 0x11b   :  { %v661_v26 = vsel %vm533_vm15, %v403_v11, %v597_v21  ;;  %694 = vst.msk [vmem:[%s1592_s3 + $0x78] sm:$0xff] %vm678_vm0, %v629_v25  ;;  %v628_v31 = vsel %vm500_vm1, %v238_v16, %v564_v22  ;;  %v248_v33 = vadd.f32 %v1267_v24, %v247_v29  ;;  %v408_v34 = vadd.f32 %v1267_v24, %v407_v30  ;;  %v889_v35 = vpop.f32.mrb[18].mxu0  ;;  %v937_v36 = vpop.f32.mrb[18].mxu1 }
 0x11c   :  { %726 = vst.msk [vmem:[%s1592_s3 + $0x178] sm:$0xff] %vm678_vm0, %v661_v26  ;;  %v660_v32 = vsel %vm532_vm2, %v398_v17, %v596_v23  ;;  %693 = vst.msk [vmem:[%s1592_s3 + $0x70] sm:$0xff] %vm678_vm0, %v628_v31  ;;  %vm503_vm3 = vcmp.ge.f32.partialorder %v253_v27, 0.0  ;;  %v567_v37 = vmul.f32 0.01, %v253_v27  ;;  %vm535_vm4 = vcmp.ge.f32.partialorder %v413_v28, 0.0 }
 0x11d   :  { %725 = vst.msk [vmem:[%s1592_s3 + $0x170] sm:$0xff] %vm678_vm0, %v660_v32  ;;  %v599_v38 = vmul.f32 0.01, %v413_v28  ;;  %vm502_vm5 = vcmp.ge.f32.partialorder %v248_v33, 0.0  ;;  %v566_v39 = vmul.f32 0.01, %v248_v33  ;;  %v263_v43 = vadd.f32 %v889_v35, %v1267_v24 }
 0x11e   :  { %vm534_vm6 = vcmp.ge.f32.partialorder %v408_v34, 0.0  ;;  %v598_v40 = vmul.f32 0.01, %v408_v34  ;;  %v631_v41 = vsel %vm503_vm3, %v253_v27, %v567_v37  ;;  %v423_v44 = vadd.f32 %v937_v36, %v1267_v24  ;;  %v257_v45 = vpop.f32.mrb[19].mxu0  ;;  %v417_v46 = vpop.f32.mrb[19].mxu1 }
 0x11f   :  { %v663_v42 = vsel %vm535_vm4, %v413_v28, %v599_v38  ;;  %696 = vst.msk [vmem:[%s1592_s3 + $0x88] sm:$0xff] %vm678_vm0, %v631_v41  ;;  %v630_v47 = vsel %vm502_vm5, %v248_v33, %v566_v39  ;;  %v258_v49 = vadd.f32 %v1267_v24, %v257_v45  ;;  %v418_v50 = vadd.f32 %v1267_v24, %v417_v46  ;;  %v892_v51 = vpop.f32.mrb[20].mxu0  ;;  %v940_v52 = vpop.f32.mrb[20].mxu1 }
 0x120   :  { %728 = vst.msk [vmem:[%s1592_s3 + $0x188] sm:$0xff] %vm678_vm0, %v663_v42  ;;  %v662_v48 = vsel %vm534_vm6, %v408_v34, %v598_v40  ;;  %695 = vst.msk [vmem:[%s1592_s3 + $0x80] sm:$0xff] %vm678_vm0, %v630_v47  ;;  %vm505_vm7 = vcmp.ge.f32.partialorder %v263_v43, 0.0  ;;  %v569_v53 = vmul.f32 0.01, %v263_v43  ;;  %vm537_vm8 = vcmp.ge.f32.partialorder %v423_v44, 0.0 }
 0x121   :  { %727 = vst.msk [vmem:[%s1592_s3 + $0x180] sm:$0xff] %vm678_vm0, %v662_v48  ;;  %v601_v54 = vmul.f32 0.01, %v423_v44  ;;  %vm504_vm9 = vcmp.ge.f32.partialorder %v258_v49, 0.0  ;;  %v568_v55 = vmul.f32 0.01, %v258_v49  ;;  %v273_v59 = vadd.f32 %v892_v51, %v1267_v24 }
 0x122   :  { %vm536_vm10 = vcmp.ge.f32.partialorder %v418_v50, 0.0  ;;  %v600_v56 = vmul.f32 0.01, %v418_v50  ;;  %v633_v57 = vsel %vm505_vm7, %v263_v43, %v569_v53  ;;  %v433_v60 = vadd.f32 %v940_v52, %v1267_v24  ;;  %v267_v61 = vpop.f32.mrb[21].mxu0  ;;  %v427_v62 = vpop.f32.mrb[21].mxu1 }
 0x123   :  { %v665_v58 = vsel %vm537_vm8, %v423_v44, %v601_v54  ;;  %698 = vst.msk [vmem:[%s1592_s3 + $0x98] sm:$0xff] %vm678_vm0, %v633_v57  ;;  %v632_v63 = vsel %vm504_vm9, %v258_v49, %v568_v55  ;;  %v268_v1 = vadd.f32 %v1267_v24, %v267_v61  ;;  %v428_v2 = vadd.f32 %v1267_v24, %v427_v62  ;;  %v895_v3 = vpop.f32.mrb[22].mxu0  ;;  %v943_v4 = vpop.f32.mrb[22].mxu1 }
 0x124   :  { %730 = vst.msk [vmem:[%s1592_s3 + $0x198] sm:$0xff] %vm678_vm0, %v665_v58  ;;  %v664_v0 = vsel %vm536_vm10, %v418_v50, %v600_v56  ;;  %697 = vst.msk [vmem:[%s1592_s3 + $0x90] sm:$0xff] %vm678_vm0, %v632_v63  ;;  %vm507_vm11 = vcmp.ge.f32.partialorder %v273_v59, 0.0  ;;  %v571_v5 = vmul.f32 0.01, %v273_v59  ;;  %vm539_vm12 = vcmp.ge.f32.partialorder %v433_v60, 0.0 }
 0x125   :  { %729 = vst.msk [vmem:[%s1592_s3 + $0x190] sm:$0xff] %vm678_vm0, %v664_v0  ;;  %v603_v6 = vmul.f32 0.01, %v433_v60  ;;  %vm506_vm13 = vcmp.ge.f32.partialorder %v268_v1, 0.0  ;;  %v570_v7 = vmul.f32 0.01, %v268_v1  ;;  %v283_v11 = vadd.f32 %v895_v3, %v1267_v24 }
 0x126   :  { %vm538_vm14 = vcmp.ge.f32.partialorder %v428_v2, 0.0  ;;  %v602_v8 = vmul.f32 0.01, %v428_v2  ;;  %v635_v9 = vsel %vm507_vm11, %v273_v59, %v571_v5  ;;  %v443_v12 = vadd.f32 %v943_v4, %v1267_v24  ;;  %v277_v13 = vpop.f32.mrb[23].mxu0  ;;  %v437_v14 = vpop.f32.mrb[23].mxu1 }
 0x127   :  { %v667_v10 = vsel %vm539_vm12, %v433_v60, %v603_v6  ;;  %700 = vst.msk [vmem:[%s1592_s3 + $0xa8] sm:$0xff] %vm678_vm0, %v635_v9  ;;  %v634_v15 = vsel %vm506_vm13, %v268_v1, %v570_v7  ;;  %v278_v17 = vadd.f32 %v1267_v24, %v277_v13  ;;  %v438_v18 = vadd.f32 %v1267_v24, %v437_v14  ;;  %v898_v19 = vpop.f32.mrb[24].mxu0  ;;  %v946_v20 = vpop.f32.mrb[24].mxu1 }
 0x128   :  { %732 = vst.msk [vmem:[%s1592_s3 + $0x1a8] sm:$0xff] %vm678_vm0, %v667_v10  ;;  %v666_v16 = vsel %vm538_vm14, %v428_v2, %v602_v8  ;;  %699 = vst.msk [vmem:[%s1592_s3 + $0xa0] sm:$0xff] %vm678_vm0, %v634_v15  ;;  %vm509_vm15 = vcmp.ge.f32.partialorder %v283_v11, 0.0  ;;  %v573_v21 = vmul.f32 0.01, %v283_v11  ;;  %vm541_vm1 = vcmp.ge.f32.partialorder %v443_v12, 0.0 }
 0x129   :  { %731 = vst.msk [vmem:[%s1592_s3 + $0x1a0] sm:$0xff] %vm678_vm0, %v666_v16  ;;  %v605_v22 = vmul.f32 0.01, %v443_v12  ;;  %vm508_vm2 = vcmp.ge.f32.partialorder %v278_v17, 0.0  ;;  %v572_v23 = vmul.f32 0.01, %v278_v17  ;;  %v293_v28 = vadd.f32 %v898_v19, %v1267_v24 }
 0x12a   :  { %vm540_vm3 = vcmp.ge.f32.partialorder %v438_v18, 0.0  ;;  %v604_v25 = vmul.f32 0.01, %v438_v18  ;;  %v637_v26 = vsel %vm509_vm15, %v283_v11, %v573_v21  ;;  %v453_v29 = vadd.f32 %v946_v20, %v1267_v24  ;;  %v287_v30 = vpop.f32.mrb[25].mxu0  ;;  %v447_v31 = vpop.f32.mrb[25].mxu1 }
 0x12b   :  { %v669_v27 = vsel %vm541_vm1, %v443_v12, %v605_v22  ;;  %702 = vst.msk [vmem:[%s1592_s3 + $0xb8] sm:$0xff] %vm678_vm0, %v637_v26  ;;  %v636_v32 = vsel %vm508_vm2, %v278_v17, %v572_v23  ;;  %v288_v34 = vadd.f32 %v1267_v24, %v287_v30  ;;  %v448_v35 = vadd.f32 %v1267_v24, %v447_v31  ;;  %v901_v36 = vpop.f32.mrb[26].mxu0  ;;  %v949_v37 = vpop.f32.mrb[26].mxu1 }
 0x12c   :  { %734 = vst.msk [vmem:[%s1592_s3 + $0x1b8] sm:$0xff] %vm678_vm0, %v669_v27  ;;  %v668_v33 = vsel %vm540_vm3, %v438_v18, %v604_v25  ;;  %701 = vst.msk [vmem:[%s1592_s3 + $0xb0] sm:$0xff] %vm678_vm0, %v636_v32  ;;  %vm511_vm4 = vcmp.ge.f32.partialorder %v293_v28, 0.0  ;;  %v575_v38 = vmul.f32 0.01, %v293_v28  ;;  %vm543_vm5 = vcmp.ge.f32.partialorder %v453_v29, 0.0 }
 0x12d   :  { %733 = vst.msk [vmem:[%s1592_s3 + $0x1b0] sm:$0xff] %vm678_vm0, %v668_v33  ;;  %v607_v39 = vmul.f32 0.01, %v453_v29  ;;  %vm510_vm6 = vcmp.ge.f32.partialorder %v288_v34, 0.0  ;;  %v574_v40 = vmul.f32 0.01, %v288_v34  ;;  %v303_v44 = vadd.f32 %v901_v36, %v1267_v24 }
 0x12e   :  { %vm542_vm7 = vcmp.ge.f32.partialorder %v448_v35, 0.0  ;;  %v606_v41 = vmul.f32 0.01, %v448_v35  ;;  %v639_v42 = vsel %vm511_vm4, %v293_v28, %v575_v38  ;;  %v463_v45 = vadd.f32 %v949_v37, %v1267_v24  ;;  %v297_v46 = vpop.f32.mrb[27].mxu0  ;;  %v457_v47 = vpop.f32.mrb[27].mxu1 }
 0x12f   :  { %v671_v43 = vsel %vm543_vm5, %v453_v29, %v607_v39  ;;  %704 = vst.msk [vmem:[%s1592_s3 + $0xc8] sm:$0xff] %vm678_vm0, %v639_v42  ;;  %v638_v48 = vsel %vm510_vm6, %v288_v34, %v574_v40  ;;  %v298_v50 = vadd.f32 %v1267_v24, %v297_v46  ;;  %v458_v51 = vadd.f32 %v1267_v24, %v457_v47  ;;  %v904_v52 = vpop.f32.mrb[28].mxu0  ;;  %v952_v53 = vpop.f32.mrb[28].mxu1 }
 0x130   :  { %736 = vst.msk [vmem:[%s1592_s3 + $0x1c8] sm:$0xff] %vm678_vm0, %v671_v43  ;;  %v670_v49 = vsel %vm542_vm7, %v448_v35, %v606_v41  ;;  %703 = vst.msk [vmem:[%s1592_s3 + $0xc0] sm:$0xff] %vm678_vm0, %v638_v48  ;;  %vm513_vm8 = vcmp.ge.f32.partialorder %v303_v44, 0.0  ;;  %v577_v54 = vmul.f32 0.01, %v303_v44  ;;  %vm545_vm9 = vcmp.ge.f32.partialorder %v463_v45, 0.0 }
 0x131   :  { %735 = vst.msk [vmem:[%s1592_s3 + $0x1c0] sm:$0xff] %vm678_vm0, %v670_v49  ;;  %v609_v55 = vmul.f32 0.01, %v463_v45  ;;  %vm512_vm10 = vcmp.ge.f32.partialorder %v298_v50, 0.0  ;;  %v576_v56 = vmul.f32 0.01, %v298_v50  ;;  %v313_v60 = vadd.f32 %v904_v52, %v1267_v24 }
 0x132   :  { %vm544_vm11 = vcmp.ge.f32.partialorder %v458_v51, 0.0  ;;  %v608_v57 = vmul.f32 0.01, %v458_v51  ;;  %v641_v58 = vsel %vm513_vm8, %v303_v44, %v577_v54  ;;  %v473_v61 = vadd.f32 %v952_v53, %v1267_v24  ;;  %v307_v62 = vpop.f32.mrb[29].mxu0  ;;  %v467_v63 = vpop.f32.mrb[29].mxu1 }
 0x133   :  { %v673_v59 = vsel %vm545_vm9, %v463_v45, %v609_v55  ;;  %706 = vst.msk [vmem:[%s1592_s3 + $0xd8] sm:$0xff] %vm678_vm0, %v641_v58  ;;  %v640_v0 = vsel %vm512_vm10, %v298_v50, %v576_v56  ;;  %v308_v2 = vadd.f32 %v1267_v24, %v307_v62  ;;  %v468_v3 = vadd.f32 %v1267_v24, %v467_v63  ;;  %v907_v4 = vpop.f32.mrb[30].mxu0  ;;  %v955_v5 = vpop.f32.mrb[30].mxu1 }
 0x134   :  { %738 = vst.msk [vmem:[%s1592_s3 + $0x1d8] sm:$0xff] %vm678_vm0, %v673_v59  ;;  %v672_v1 = vsel %vm544_vm11, %v458_v51, %v608_v57  ;;  %705 = vst.msk [vmem:[%s1592_s3 + $0xd0] sm:$0xff] %vm678_vm0, %v640_v0  ;;  %vm515_vm12 = vcmp.ge.f32.partialorder %v313_v60, 0.0  ;;  %v579_v6 = vmul.f32 0.01, %v313_v60  ;;  %vm547_vm13 = vcmp.ge.f32.partialorder %v473_v61, 0.0 }
 0x135   :  { %737 = vst.msk [vmem:[%s1592_s3 + $0x1d0] sm:$0xff] %vm678_vm0, %v672_v1  ;;  %v611_v7 = vmul.f32 0.01, %v473_v61  ;;  %vm514_vm14 = vcmp.ge.f32.partialorder %v308_v2, 0.0  ;;  %v578_v8 = vmul.f32 0.01, %v308_v2  ;;  %v323_v12 = vadd.f32 %v907_v4, %v1267_v24 }
 0x136   :  { %vm546_vm15 = vcmp.ge.f32.partialorder %v468_v3, 0.0  ;;  %v610_v9 = vmul.f32 0.01, %v468_v3  ;;  %v643_v10 = vsel %vm515_vm12, %v313_v60, %v579_v6  ;;  %v483_v13 = vadd.f32 %v955_v5, %v1267_v24  ;;  %v317_v14 = vpop.f32.mrb[31].mxu0  ;;  %v477_v15 = vpop.f32.mrb[31].mxu1 }
 0x137   :  { %v675_v11 = vsel %vm547_vm13, %v473_v61, %v611_v7  ;;  %708 = vst.msk [vmem:[%s1592_s3 + $0xe8] sm:$0xff] %vm678_vm0, %v643_v10  ;;  %v642_v16 = vsel %vm514_vm14, %v308_v2, %v578_v8  ;;  %v318_v18 = vadd.f32 %v1267_v24, %v317_v14  ;;  %v478_v19 = vadd.f32 %v1267_v24, %v477_v15 }
 0x138   :  { %740 = vst.msk [vmem:[%s1592_s3 + $0x1e8] sm:$0xff] %vm678_vm0, %v675_v11  ;;  %v674_v17 = vsel %vm546_vm15, %v468_v3, %v610_v9  ;;  %707 = vst.msk [vmem:[%s1592_s3 + $0xe0] sm:$0xff] %vm678_vm0, %v642_v16  ;;  %vm517_vm1 = vcmp.ge.f32.partialorder %v323_v12, 0.0  ;;  %v581_v20 = vmul.f32 0.01, %v323_v12  ;;  %vm549_vm2 = vcmp.ge.f32.partialorder %v483_v13, 0.0 }
 0x139   :  { %739 = vst.msk [vmem:[%s1592_s3 + $0x1e0] sm:$0xff] %vm678_vm0, %v674_v17  ;;  %v613_v21 = vmul.f32 0.01, %v483_v13  ;;  %vm516_vm3 = vcmp.ge.f32.partialorder %v318_v18, 0.0  ;;  %v580_v22 = vmul.f32 0.01, %v318_v18 }
 0x13a   :  { %vm548_vm4 = vcmp.ge.f32.partialorder %v478_v19, 0.0  ;;  %v612_v23 = vmul.f32 0.01, %v478_v19  ;;  %v645_v25 = vsel %vm517_vm1, %v323_v12, %v581_v20 }
 0x13b   :  { %v677_v24 = vsel %vm549_vm2, %v483_v13, %v613_v21  ;;  %710 = vst.msk [vmem:[%s1592_s3 + $0xf8] sm:$0xff] %vm678_vm0, %v645_v25  ;;  %v644_v26 = vsel %vm516_vm3, %v318_v18, %v580_v22 }
 0x13c   :  { %742 = vst.msk [vmem:[%s1592_s3 + $0x1f8] sm:$0xff] %vm678_vm0, %v677_v24  ;;  %v676_v27 = vsel %vm548_vm4, %v478_v19, %v612_v23  ;;  %709 = vst.msk [vmem:[%s1592_s3 + $0xf0] sm:$0xff] %vm678_vm0, %v644_v26 }
 0x13d   :  { %741 = vst.msk [vmem:[%s1592_s3 + $0x1f0] sm:$0xff] %vm678_vm0, %v676_v27 }

// kernel: ssat_d_makeup_forward.5
= control target key start
LH: loop header
LB: loop body
LE: loop exit
PB: predicated region body
PF: predicated region fallthrough
CT: control target
= control target key end

     0   :  { %vm278_vm0 = vcmask 261120   ;;  %s725_s1 = inlined_call_operand.vmem [shape: f32[256,32], index: 1, kind: input, shape index: {}]   ;;  %s726_s0 = inlined_call_operand.vmem [shape: f32[128,256], index: 0, kind: input, shape index: {}]   ;;  %s727_s2 = inlined_call_operand.vmem [shape: f32[1,32], index: 2, kind: input, shape index: {}]   ;;  %s728_s3 = inlined_call_operand.vmem [shape: f32[128,32], index: 3, kind: output, shape index: {}]  }
   0x1   :  { %v62_v0 = vld [vmem:[%s725_s1 + $0x80] sm:$0xff]  ;;  %v63_v1 = vld [vmem:[%s725_s1 + $0x88] sm:$0xff]  ;;  %v64_v5 = vld [vmem:[%s725_s1 + $0x90] sm:$0xff] }
   0x2   :  { %v46_v2 = vld [vmem:[%s725_s1] sm:$0xff]  ;;  %v380_v3 = vpack.c.bf16 %v63_v1, %v62_v0  ;;  %v47_v4 = vld [vmem:[%s725_s1 + $0x8] sm:$0xff]  ;;  %v65_v6 = vld [vmem:[%s725_s1 + $0x98] sm:$0xff] }
   0x3   :  { %v382_v7 = vpack.c.bf16 %v47_v4, %v46_v2  ;;  %v384_v8 = vpack.c.bf16 %v65_v6, %v64_v5  ;;  %v48_v9 = vld [vmem:[%s725_s1 + $0x10] sm:$0xff]  ;;  %v49_v10 = vld [vmem:[%s725_s1 + $0x18] sm:$0xff]  ;;  %v66_v11 = vld [vmem:[%s725_s1 + $0xa0] sm:$0xff] }
   0x4   :  { %381 = vmatprep.subr.bf16.mxu0 %v380_v3  ;;  %412 = vmatprep.subr.bf16.mxu1 %v380_v3  ;;  %v67_v12 = vld [vmem:[%s725_s1 + $0xa8] sm:$0xff]  ;;  %v386_v13 = vpack.c.bf16 %v49_v10, %v48_v9  ;;  %v50_v15 = vld [vmem:[%s725_s1 + $0x20] sm:$0xff]  ;;  %v68_v17 = vld [vmem:[%s725_s1 + $0xb0] sm:$0xff] }
   0x5   :  { %383 = vmatpush3.bf16.msra.mxu0 %v382_v7  ;;  %420 = vmatpush3.bf16.msra.mxu1 %v382_v7  ;;  %v388_v14 = vpack.c.bf16 %v67_v12, %v66_v11  ;;  %v51_v16 = vld [vmem:[%s725_s1 + $0x28] sm:$0xff]  ;;  %v69_v18 = vld [vmem:[%s725_s1 + $0xb8] sm:$0xff]  ;;  %v52_v21 = vld [vmem:[%s725_s1 + $0x30] sm:$0xff] }
   0x6   :  { %385 = vmatprep.subr.bf16.mxu0 %v384_v8  ;;  %413 = vmatprep.subr.bf16.mxu1 %v384_v8  ;;  %v390_v19 = vpack.c.bf16 %v51_v16, %v50_v15  ;;  %v392_v20 = vpack.c.bf16 %v69_v18, %v68_v17  ;;  %v53_v22 = vld [vmem:[%s725_s1 + $0x38] sm:$0xff]  ;;  %v70_v23 = vld [vmem:[%s725_s1 + $0xc0] sm:$0xff]  ;;  %v71_v24 = vld [vmem:[%s725_s1 + $0xc8] sm:$0xff] }
   0x7   :  { %v15_v25 = vld [vmem:[%s726_s0 + $0x8] sm:$0xff]  ;;  %v394_v27 = vpack.c.bf16 %v53_v22, %v52_v21  ;;  %v396_v28 = vpack.c.bf16 %v71_v24, %v70_v23  ;;  %v54_v29 = vld [vmem:[%s725_s1 + $0x40] sm:$0xff]  ;;  %v72_v31 = vld [vmem:[%s725_s1 + $0xd0] sm:$0xff] }
   0x8   :  { %149 = vmatprep.mubr.f32.mxu0 %v15_v25  ;;  %v31_v26 = vld [vmem:[%s726_s0 + $0x88] sm:$0xff]  ;;  %v73_v32 = vld [vmem:[%s725_s1 + $0xd8] sm:$0xff]  ;;  %v56_v35 = vld [vmem:[%s725_s1 + $0x50] sm:$0xff] }
   0x9   :  { %387 = vmatpush3.bf16.msra.mxu0 %v386_v13  ;;  %421 = vmatpush3.bf16.msra.mxu1 %v386_v13  ;;  %v55_v30 = vld [vmem:[%s725_s1 + $0x48] sm:$0xff]  ;;  %v400_v34 = vpack.c.bf16 %v73_v32, %v72_v31  ;;  %v57_v36 = vld [vmem:[%s725_s1 + $0x58] sm:$0xff]  ;;  %v74_v37 = vld [vmem:[%s725_s1 + $0xe0] sm:$0xff] }
   0xa   :  { %389 = vmatprep.subr.bf16.mxu0 %v388_v14  ;;  %414 = vmatprep.subr.bf16.mxu1 %v388_v14  ;;  %v398_v33 = vpack.c.bf16 %v55_v30, %v54_v29  ;;  %v75_v38 = vld [vmem:[%s725_s1 + $0xe8] sm:$0xff]  ;;  %v402_v39 = vpack.c.bf16 %v57_v36, %v56_v35  ;;  %v58_v41 = vld [vmem:[%s725_s1 + $0x60] sm:$0xff]  ;;  %v76_v43 = vld [vmem:[%s725_s1 + $0xf0] sm:$0xff] }
   0xb   :  { %189 = vmatprep.mubr.f32.mxu1 %v31_v26  ;;  %v404_v40 = vpack.c.bf16 %v75_v38, %v74_v37  ;;  %v59_v42 = vld [vmem:[%s725_s1 + $0x68] sm:$0xff]  ;;  %v77_v44 = vld [vmem:[%s725_s1 + $0xf8] sm:$0xff]  ;;  %v60_v47 = vld [vmem:[%s725_s1 + $0x70] sm:$0xff] }
   0xc   :  { %v406_v45 = vpack.c.bf16 %v59_v42, %v58_v41  ;;  %v408_v46 = vpack.c.bf16 %v77_v44, %v76_v43  ;;  %v61_v48 = vld [vmem:[%s725_s1 + $0x78] sm:$0xff]  ;;  %v14_v50 = vld [vmem:[%s726_s0] sm:$0xff]  ;;  %v16_v54 = vld [vmem:[%s726_s0 + $0x10] sm:$0xff] }
   0xd   :  { %391 = vmatpush3.bf16.msra.mxu0 %v390_v19  ;;  %422 = vmatpush3.bf16.msra.mxu1 %v390_v19  ;;  %v410_v49 = vpack.c.bf16 %v61_v48, %v60_v47  ;;  %v30_v51 = vld [vmem:[%s726_s0 + $0x80] sm:$0xff]  ;;  %v17_v52 = vld [vmem:[%s726_s0 + $0x18] sm:$0xff]  ;;  %v32_v55 = vld [vmem:[%s726_s0 + $0x90] sm:$0xff] }
   0xe   :  { %393 = vmatprep.subr.bf16.mxu0 %v392_v20  ;;  %415 = vmatprep.subr.bf16.mxu1 %v392_v20  ;;  %v33_v53 = vld [vmem:[%s726_s0 + $0x98] sm:$0xff]  ;;  %v19_v56 = vld [vmem:[%s726_s0 + $0x28] sm:$0xff]  ;;  %v18_v58 = vld [vmem:[%s726_s0 + $0x20] sm:$0xff] }
   0xf   :  { %v35_v57 = vld [vmem:[%s726_s0 + $0xa8] sm:$0xff]  ;;  %v34_v59 = vld [vmem:[%s726_s0 + $0xa0] sm:$0xff]  ;;  %v21_v60 = vld [vmem:[%s726_s0 + $0x38] sm:$0xff] }
  0x10   :  { %v37_v61 = vld [vmem:[%s726_s0 + $0xb8] sm:$0xff]  ;;  %v20_v62 = vld [vmem:[%s726_s0 + $0x30] sm:$0xff]  ;;  %v23_v0 = vld [vmem:[%s726_s0 + $0x48] sm:$0xff] }
  0x11   :  { %395 = vmatpush3.bf16.msra.mxu0 %v394_v27  ;;  %423 = vmatpush3.bf16.msra.mxu1 %v394_v27  ;;  %v36_v63 = vld [vmem:[%s726_s0 + $0xb0] sm:$0xff]  ;;  %v39_v1 = vld [vmem:[%s726_s0 + $0xc8] sm:$0xff]  ;;  %v22_v2 = vld [vmem:[%s726_s0 + $0x40] sm:$0xff] }
  0x12   :  { %397 = vmatprep.subr.bf16.mxu0 %v396_v28  ;;  %416 = vmatprep.subr.bf16.mxu1 %v396_v28  ;;  %v38_v3 = vld [vmem:[%s726_s0 + $0xc0] sm:$0xff]  ;;  %v25_v4 = vld [vmem:[%s726_s0 + $0x58] sm:$0xff]  ;;  %v24_v6 = vld [vmem:[%s726_s0 + $0x50] sm:$0xff] }
  0x13   :  { %v41_v5 = vld [vmem:[%s726_s0 + $0xd8] sm:$0xff]  ;;  %v40_v7 = vld [vmem:[%s726_s0 + $0xd0] sm:$0xff]  ;;  %v27_v8 = vld [vmem:[%s726_s0 + $0x68] sm:$0xff] }
  0x14   :  { %v43_v9 = vld [vmem:[%s726_s0 + $0xe8] sm:$0xff]  ;;  %v26_v10 = vld [vmem:[%s726_s0 + $0x60] sm:$0xff]  ;;  %v29_v12 = vld [vmem:[%s726_s0 + $0x78] sm:$0xff] }
  0x15   :  { %399 = vmatpush3.bf16.msra.mxu0 %v398_v33  ;;  %424 = vmatpush3.bf16.msra.mxu1 %v398_v33  ;;  %v42_v11 = vld [vmem:[%s726_s0 + $0xe0] sm:$0xff]  ;;  %v45_v13 = vld [vmem:[%s726_s0 + $0xf8] sm:$0xff]  ;;  %v28_v14 = vld [vmem:[%s726_s0 + $0x70] sm:$0xff] }
  0x16   :  { %401 = vmatprep.subr.bf16.mxu0 %v400_v34  ;;  %417 = vmatprep.subr.bf16.mxu1 %v400_v34  ;;  %v44_v15 = vld [vmem:[%s726_s0 + $0xf0] sm:$0xff]  ;;  %v643_v18 = vld [vmem:[%s727_s2] ss:$0 sm:$0xff] }
  0x19   :  { %403 = vmatpush3.bf16.msra.mxu0 %v402_v39  ;;  %425 = vmatpush3.bf16.msra.mxu1 %v402_v39 }
  0x1a   :  { %405 = vmatprep.subr.bf16.mxu0 %v404_v40  ;;  %418 = vmatprep.subr.bf16.mxu1 %v404_v40 }
  0x1d   :  { %407 = vmatpush3.bf16.msra.mxu0 %v406_v45  ;;  %426 = vmatpush3.bf16.msra.mxu1 %v406_v45 }
  0x1e   :  { %409 = vmatprep.subr.bf16.mxu0 %v408_v46  ;;  %419 = vmatprep.subr.bf16.mxu1 %v408_v46 }
  0x21   :  { %411 = vmatpush3.bf16.msra.mxu0 %v410_v49  ;;  %427 = vmatpush3.bf16.msra.mxu1 %v410_v49 }
  0x24   :  { %150 = vmatmul.mubr.f32.vlgmr.msra.gmra.mrb[0].mxu0 %v14_v50  ;;  %190 = vmatmul.mubr.f32.vlgmr.msra.gmra.mrb[0].mxu1 %v30_v51 }
  0x25   :  { %154 = vmatprep.mubr.f32.mxu0 %v17_v52  ;;  %194 = vmatprep.mubr.f32.mxu1 %v33_v53 }
  0x28   :  { %155 = vmatmul.mubr.f32.gmra.mrb[2].mxu0 %v16_v54  ;;  %195 = vmatmul.mubr.f32.gmra.mrb[2].mxu1 %v32_v55 }
  0x29   :  { %159 = vmatprep.mubr.f32.mxu0 %v19_v56  ;;  %199 = vmatprep.mubr.f32.mxu1 %v35_v57 }
  0x2c   :  { %160 = vmatmul.mubr.f32.gmra.mrb[4].mxu0 %v18_v58  ;;  %200 = vmatmul.mubr.f32.gmra.mrb[4].mxu1 %v34_v59 }
  0x2d   :  { %164 = vmatprep.mubr.f32.mxu0 %v21_v60  ;;  %204 = vmatprep.mubr.f32.mxu1 %v37_v61 }
  0x30   :  { %165 = vmatmul.mubr.f32.gmra.mrb[6].mxu0 %v20_v62  ;;  %205 = vmatmul.mubr.f32.gmra.mrb[6].mxu1 %v36_v63 }
  0x31   :  { %169 = vmatprep.mubr.f32.mxu0 %v23_v0  ;;  %209 = vmatprep.mubr.f32.mxu1 %v39_v1 }
  0x34   :  { %170 = vmatmul.mubr.f32.gmra.mrb[8].mxu0 %v22_v2  ;;  %210 = vmatmul.mubr.f32.gmra.mrb[8].mxu1 %v38_v3 }
  0x35   :  { %174 = vmatprep.mubr.f32.mxu0 %v25_v4  ;;  %214 = vmatprep.mubr.f32.mxu1 %v41_v5 }
  0x38   :  { %175 = vmatmul.mubr.f32.gmra.mrb[10].mxu0 %v24_v6  ;;  %215 = vmatmul.mubr.f32.gmra.mrb[10].mxu1 %v40_v7 }
  0x39   :  { %179 = vmatprep.mubr.f32.mxu0 %v27_v8  ;;  %219 = vmatprep.mubr.f32.mxu1 %v43_v9 }
  0x3c   :  { %180 = vmatmul.mubr.f32.gmra.mrb[12].mxu0 %v26_v10  ;;  %220 = vmatmul.mubr.f32.gmra.mrb[12].mxu1 %v42_v11 }
  0x3d   :  { %184 = vmatprep.mubr.f32.mxu0 %v29_v12  ;;  %224 = vmatprep.mubr.f32.mxu1 %v45_v13 }
  0x40   :  { %185 = vmatmul.mubr.f32.gmra.mrb[14].mxu0 %v28_v14  ;;  %225 = vmatmul.mubr.f32.gmra.mrb[14].mxu1 %v44_v15 }
  0xf7   :  { %v332_v16 = vpop.f32.mrb[0].mxu0  ;;  %v356_v17 = vpop.f32.mrb[0].mxu1 }
  0xf8   :  { %v333_v19 = vpop.f32.mrb[1].mxu0  ;;  %v357_v20 = vpop.f32.mrb[1].mxu1 }
  0xf9   :  { %v334_v21 = vadd.f32 %v333_v19, %v332_v16  ;;  %v358_v22 = vadd.f32 %v357_v20, %v356_v17 }
  0xfb   :  { %v152_v23 = vadd.f32 %v334_v21, %v643_v18  ;;  %v192_v24 = vadd.f32 %v358_v22, %v643_v18  ;;  %v335_v25 = vpop.f32.mrb[2].mxu0  ;;  %v359_v26 = vpop.f32.mrb[2].mxu1 }
  0xfc   :  { %v336_v27 = vpop.f32.mrb[3].mxu0  ;;  %v360_v28 = vpop.f32.mrb[3].mxu1 }
  0xfd   :  { %vm230_vm1 = vcmp.ge.f32.partialorder %v152_v23, 0.0  ;;  %v246_v29 = vmul.f32 0.01, %v152_v23  ;;  %vm238_vm2 = vcmp.ge.f32.partialorder %v192_v24, 0.0  ;;  %v254_v30 = vmul.f32 0.01, %v192_v24 }
  0xfe   :  { %v337_v31 = vadd.f32 %v336_v27, %v335_v25  ;;  %v361_v32 = vadd.f32 %v360_v28, %v359_v26 }
  0xff   :  { %v262_v33 = vsel %vm230_vm1, %v152_v23, %v246_v29  ;;  %v270_v34 = vsel %vm238_vm2, %v192_v24, %v254_v30  ;;  %v338_v35 = vpop.f32.mrb[4].mxu0  ;;  %v362_v36 = vpop.f32.mrb[4].mxu1 }
 0x100   :  { %279 = vst.msk [vmem:[%s728_s3] sm:$0xff] %vm278_vm0, %v262_v33  ;;  %287 = vst.msk [vmem:[%s728_s3 + $0x40] sm:$0xff] %vm278_vm0, %v270_v34  ;;  %v157_v37 = vadd.f32 %v337_v31, %v643_v18  ;;  %v197_v38 = vadd.f32 %v361_v32, %v643_v18  ;;  %v339_v39 = vpop.f32.mrb[5].mxu0  ;;  %v363_v40 = vpop.f32.mrb[5].mxu1 }
 0x101   :  { %v340_v41 = vadd.f32 %v339_v39, %v338_v35  ;;  %v364_v42 = vadd.f32 %v363_v40, %v362_v36 }
 0x102   :  { %vm231_vm3 = vcmp.ge.f32.partialorder %v157_v37, 0.0  ;;  %v247_v43 = vmul.f32 0.01, %v157_v37  ;;  %vm239_vm4 = vcmp.ge.f32.partialorder %v197_v38, 0.0  ;;  %v255_v44 = vmul.f32 0.01, %v197_v38 }
 0x103   :  { %v162_v45 = vadd.f32 %v340_v41, %v643_v18  ;;  %v202_v46 = vadd.f32 %v364_v42, %v643_v18  ;;  %v341_v47 = vpop.f32.mrb[6].mxu0  ;;  %v365_v48 = vpop.f32.mrb[6].mxu1 }
 0x104   :  { %v263_v49 = vsel %vm231_vm3, %v157_v37, %v247_v43  ;;  %v271_v50 = vsel %vm239_vm4, %v197_v38, %v255_v44  ;;  %v342_v51 = vpop.f32.mrb[7].mxu0  ;;  %v366_v52 = vpop.f32.mrb[7].mxu1 }
 0x105   :  { %280 = vst.msk [vmem:[%s728_s3 + $0x8] sm:$0xff] %vm278_vm0, %v263_v49  ;;  %288 = vst.msk [vmem:[%s728_s3 + $0x48] sm:$0xff] %vm278_vm0, %v271_v50  ;;  %vm232_vm5 = vcmp.ge.f32.partialorder %v162_v45, 0.0  ;;  %v248_v53 = vmul.f32 0.01, %v162_v45  ;;  %vm240_vm6 = vcmp.ge.f32.partialorder %v202_v46, 0.0  ;;  %v343_v55 = vadd.f32 %v342_v51, %v341_v47 }
 0x106   :  { %v256_v54 = vmul.f32 0.01, %v202_v46  ;;  %v367_v56 = vadd.f32 %v366_v52, %v365_v48 }
 0x107   :  { %v264_v57 = vsel %vm232_vm5, %v162_v45, %v248_v53  ;;  %v344_v59 = vpop.f32.mrb[8].mxu0  ;;  %v368_v60 = vpop.f32.mrb[8].mxu1  ;;  %v167_v61 = vadd.f32 %v343_v55, %v643_v18 }
 0x108   :  { %v272_v58 = vsel %vm240_vm6, %v202_v46, %v256_v54  ;;  %281 = vst.msk [vmem:[%s728_s3 + $0x10] sm:$0xff] %vm278_vm0, %v264_v57  ;;  %v207_v62 = vadd.f32 %v367_v56, %v643_v18  ;;  %v345_v63 = vpop.f32.mrb[9].mxu0  ;;  %v369_v0 = vpop.f32.mrb[9].mxu1 }
 0x109   :  { %289 = vst.msk [vmem:[%s728_s3 + $0x50] sm:$0xff] %vm278_vm0, %v272_v58  ;;  %v346_v1 = vadd.f32 %v345_v63, %v344_v59  ;;  %v370_v2 = vadd.f32 %v369_v0, %v368_v60  ;;  %vm233_vm7 = vcmp.ge.f32.partialorder %v167_v61, 0.0  ;;  %v249_v3 = vmul.f32 0.01, %v167_v61 }
 0x10a   :  { %vm241_vm8 = vcmp.ge.f32.partialorder %v207_v62, 0.0  ;;  %v257_v4 = vmul.f32 0.01, %v207_v62 }
 0x10b   :  { %v172_v5 = vadd.f32 %v346_v1, %v643_v18  ;;  %v212_v6 = vadd.f32 %v370_v2, %v643_v18  ;;  %v347_v7 = vpop.f32.mrb[10].mxu0  ;;  %v371_v8 = vpop.f32.mrb[10].mxu1  ;;  %v265_v9 = vsel %vm233_vm7, %v167_v61, %v249_v3 }
 0x10c   :  { %v273_v10 = vsel %vm241_vm8, %v207_v62, %v257_v4  ;;  %v348_v11 = vpop.f32.mrb[11].mxu0  ;;  %v372_v12 = vpop.f32.mrb[11].mxu1  ;;  %282 = vst.msk [vmem:[%s728_s3 + $0x18] sm:$0xff] %vm278_vm0, %v265_v9 }
 0x10d   :  { %290 = vst.msk [vmem:[%s728_s3 + $0x58] sm:$0xff] %vm278_vm0, %v273_v10  ;;  %vm234_vm9 = vcmp.ge.f32.partialorder %v172_v5, 0.0  ;;  %v250_v13 = vmul.f32 0.01, %v172_v5  ;;  %vm242_vm10 = vcmp.ge.f32.partialorder %v212_v6, 0.0  ;;  %v349_v15 = vadd.f32 %v348_v11, %v347_v7 }
 0x10e   :  { %v258_v14 = vmul.f32 0.01, %v212_v6  ;;  %v373_v16 = vadd.f32 %v372_v12, %v371_v8 }
 0x10f   :  { %v266_v17 = vsel %vm234_vm9, %v172_v5, %v250_v13  ;;  %v350_v20 = vpop.f32.mrb[12].mxu0  ;;  %v374_v21 = vpop.f32.mrb[12].mxu1  ;;  %v177_v22 = vadd.f32 %v349_v15, %v643_v18 }
 0x110   :  { %v274_v19 = vsel %vm242_vm10, %v212_v6, %v258_v14  ;;  %283 = vst.msk [vmem:[%s728_s3 + $0x20] sm:$0xff] %vm278_vm0, %v266_v17  ;;  %v217_v23 = vadd.f32 %v373_v16, %v643_v18  ;;  %v351_v24 = vpop.f32.mrb[13].mxu0  ;;  %v375_v25 = vpop.f32.mrb[13].mxu1 }
 0x111   :  { %291 = vst.msk [vmem:[%s728_s3 + $0x60] sm:$0xff] %vm278_vm0, %v274_v19  ;;  %v352_v26 = vadd.f32 %v351_v24, %v350_v20  ;;  %v376_v27 = vadd.f32 %v375_v25, %v374_v21  ;;  %vm235_vm11 = vcmp.ge.f32.partialorder %v177_v22, 0.0  ;;  %v251_v28 = vmul.f32 0.01, %v177_v22 }
 0x112   :  { %vm243_vm12 = vcmp.ge.f32.partialorder %v217_v23, 0.0  ;;  %v259_v29 = vmul.f32 0.01, %v217_v23 }
 0x113   :  { %v182_v30 = vadd.f32 %v352_v26, %v643_v18  ;;  %v222_v31 = vadd.f32 %v376_v27, %v643_v18  ;;  %v353_v32 = vpop.f32.mrb[14].mxu0  ;;  %v377_v33 = vpop.f32.mrb[14].mxu1  ;;  %v267_v34 = vsel %vm235_vm11, %v177_v22, %v251_v28 }
 0x114   :  { %v275_v35 = vsel %vm243_vm12, %v217_v23, %v259_v29  ;;  %v354_v36 = vpop.f32.mrb[15].mxu0  ;;  %v378_v37 = vpop.f32.mrb[15].mxu1  ;;  %284 = vst.msk [vmem:[%s728_s3 + $0x28] sm:$0xff] %vm278_vm0, %v267_v34 }
 0x115   :  { %292 = vst.msk [vmem:[%s728_s3 + $0x68] sm:$0xff] %vm278_vm0, %v275_v35  ;;  %vm236_vm13 = vcmp.ge.f32.partialorder %v182_v30, 0.0  ;;  %v252_v38 = vmul.f32 0.01, %v182_v30  ;;  %vm244_vm14 = vcmp.ge.f32.partialorder %v222_v31, 0.0  ;;  %v355_v40 = vadd.f32 %v354_v36, %v353_v32 }
 0x116   :  { %v260_v39 = vmul.f32 0.01, %v222_v31  ;;  %v379_v41 = vadd.f32 %v378_v37, %v377_v33 }
 0x117   :  { %v268_v42 = vsel %vm236_vm13, %v182_v30, %v252_v38  ;;  %v187_v44 = vadd.f32 %v355_v40, %v643_v18 }
 0x118   :  { %v276_v43 = vsel %vm244_vm14, %v222_v31, %v260_v39  ;;  %285 = vst.msk [vmem:[%s728_s3 + $0x30] sm:$0xff] %vm278_vm0, %v268_v42  ;;  %v227_v45 = vadd.f32 %v379_v41, %v643_v18 }
 0x119   :  { %293 = vst.msk [vmem:[%s728_s3 + $0x70] sm:$0xff] %vm278_vm0, %v276_v43  ;;  %vm237_vm15 = vcmp.ge.f32.partialorder %v187_v44, 0.0  ;;  %v253_v46 = vmul.f32 0.01, %v187_v44 }
 0x11a   :  { %vm245_vm1 = vcmp.ge.f32.partialorder %v227_v45, 0.0  ;;  %v261_v47 = vmul.f32 0.01, %v227_v45 }
 0x11b   :  { %v269_v48 = vsel %vm237_vm15, %v187_v44, %v253_v46 }
 0x11c   :  { %v277_v49 = vsel %vm245_vm1, %v227_v45, %v261_v47  ;;  %286 = vst.msk [vmem:[%s728_s3 + $0x38] sm:$0xff] %vm278_vm0, %v269_v48 }
 0x11d   :  { %294 = vst.msk [vmem:[%s728_s3 + $0x78] sm:$0xff] %vm278_vm0, %v277_v49 }

// kernel: ssat_d_makeup_forward.6
= control target key start
LH: loop header
LB: loop body
LE: loop exit
PB: predicated region body
PF: predicated region fallthrough
CT: control target
= control target key end

     0   :  { %vm263_vm0 = vcmask 523264   ;;  %s658_s1 = inlined_call_operand.vmem [shape: f32[384,64], index: 1, kind: input, shape index: {}]   ;;  %s659_s0 = inlined_call_operand.vmem [shape: f32[32,384], index: 0, kind: input, shape index: {}]   ;;  %s660_s2 = inlined_call_operand.vmem [shape: f32[1,64], index: 2, kind: input, shape index: {}]   ;;  %s661_s3 = inlined_call_operand.vmem [shape: f32[32,64], index: 3, kind: output, shape index: {}]  }
   0x1   :  { %v42_v0 = vld [vmem:[%s658_s1 + $0x80] sm:$0xff]  ;;  %v43_v1 = vld [vmem:[%s658_s1 + $0x88] sm:$0xff]  ;;  %v44_v5 = vld [vmem:[%s658_s1 + $0x90] sm:$0xff] }
   0x2   :  { %v26_v2 = vld [vmem:[%s658_s1] sm:$0xff]  ;;  %v375_v3 = vpack.c.bf16 %v43_v1, %v42_v0  ;;  %v27_v4 = vld [vmem:[%s658_s1 + $0x8] sm:$0xff]  ;;  %v45_v6 = vld [vmem:[%s658_s1 + $0x98] sm:$0xff] }
   0x3   :  { %v377_v7 = vpack.c.bf16 %v27_v4, %v26_v2  ;;  %v379_v8 = vpack.c.bf16 %v45_v6, %v44_v5  ;;  %v58_v9 = vld [vmem:[%s658_s1 + $0x100] sm:$0xff]  ;;  %v59_v10 = vld [vmem:[%s658_s1 + $0x108] sm:$0xff]  ;;  %v28_v11 = vld [vmem:[%s658_s1 + $0x10] sm:$0xff] }
   0x4   :  { %376 = vmatprep.subr.bf16.mxu0 %v375_v3  ;;  %v407_v12 = vpack.c.bf16 %v59_v10, %v58_v9  ;;  %v29_v13 = vld [vmem:[%s658_s1 + $0x18] sm:$0xff]  ;;  %v46_v14 = vld [vmem:[%s658_s1 + $0xa0] sm:$0xff]  ;;  %v47_v15 = vld [vmem:[%s658_s1 + $0xa8] sm:$0xff] }
   0x5   :  { %378 = vmatpush3.bf16.msra.mxu0 %v377_v7  ;;  %v381_v16 = vpack.c.bf16 %v29_v13, %v28_v11  ;;  %v60_v17 = vld [vmem:[%s658_s1 + $0x110] sm:$0xff]  ;;  %v61_v18 = vld [vmem:[%s658_s1 + $0x118] sm:$0xff]  ;;  %v383_v19 = vpack.c.bf16 %v47_v15, %v46_v14  ;;  %v30_v21 = vld [vmem:[%s658_s1 + $0x20] sm:$0xff] }
   0x6   :  { %380 = vmatprep.subr.bf16.mxu0 %v379_v8  ;;  %408 = vmatprep.subr.bf16.mxu1 %v407_v12  ;;  %v411_v20 = vpack.c.bf16 %v61_v18, %v60_v17  ;;  %v31_v22 = vld [vmem:[%s658_s1 + $0x28] sm:$0xff]  ;;  %v48_v23 = vld [vmem:[%s658_s1 + $0xb0] sm:$0xff]  ;;  %v49_v24 = vld [vmem:[%s658_s1 + $0xb8] sm:$0xff] }
   0x7   :  { %410 = vmatpush3.bf16.msra.mxu1 %v407_v12  ;;  %v62_v25 = vld [vmem:[%s658_s1 + $0x120] sm:$0xff]  ;;  %v63_v26 = vld [vmem:[%s658_s1 + $0x128] sm:$0xff]  ;;  %v385_v28 = vpack.c.bf16 %v31_v22, %v30_v21  ;;  %v64_v29 = vld [vmem:[%s658_s1 + $0x130] sm:$0xff]  ;;  %v387_v31 = vpack.c.bf16 %v49_v24, %v48_v23 }
   0x8   :  { %412 = vmatprep.subr.bf16.mxu1 %v411_v20  ;;  %v415_v27 = vpack.c.bf16 %v63_v26, %v62_v25  ;;  %v65_v30 = vld [vmem:[%s658_s1 + $0x138] sm:$0xff]  ;;  %v32_v32 = vld [vmem:[%s658_s1 + $0x30] sm:$0xff]  ;;  %v50_v34 = vld [vmem:[%s658_s1 + $0xc0] sm:$0xff] }
   0x9   :  { %382 = vmatpush3.bf16.msra.mxu0 %v381_v16  ;;  %v33_v33 = vld [vmem:[%s658_s1 + $0x38] sm:$0xff]  ;;  %v51_v35 = vld [vmem:[%s658_s1 + $0xc8] sm:$0xff]  ;;  %v419_v36 = vpack.c.bf16 %v65_v30, %v64_v29  ;;  %v66_v38 = vld [vmem:[%s658_s1 + $0x140] sm:$0xff] }
   0xa   :  { %384 = vmatprep.subr.bf16.mxu0 %v383_v19  ;;  %v389_v37 = vpack.c.bf16 %v33_v33, %v32_v32  ;;  %v67_v39 = vld [vmem:[%s658_s1 + $0x148] sm:$0xff]  ;;  %v391_v40 = vpack.c.bf16 %v51_v35, %v50_v34  ;;  %v34_v41 = vld [vmem:[%s658_s1 + $0x40] sm:$0xff]  ;;  %v52_v43 = vld [vmem:[%s658_s1 + $0xd0] sm:$0xff] }
   0xb   :  { %414 = vmatpush3.bf16.msra.mxu1 %v411_v20  ;;  %v35_v42 = vld [vmem:[%s658_s1 + $0x48] sm:$0xff]  ;;  %v53_v44 = vld [vmem:[%s658_s1 + $0xd8] sm:$0xff]  ;;  %v423_v45 = vpack.c.bf16 %v67_v39, %v66_v38  ;;  %v68_v48 = vld [vmem:[%s658_s1 + $0x150] sm:$0xff] }
   0xc   :  { %416 = vmatprep.subr.bf16.mxu1 %v415_v27  ;;  %v15_v46 = vld [vmem:[%s659_s0 + $0x8] sm:$0xff]  ;;  %v393_v47 = vpack.c.bf16 %v35_v42, %v34_v41  ;;  %v69_v49 = vld [vmem:[%s658_s1 + $0x158] sm:$0xff]  ;;  %v395_v50 = vpack.c.bf16 %v53_v44, %v52_v43  ;;  %v36_v51 = vld [vmem:[%s658_s1 + $0x50] sm:$0xff] }
   0xd   :  { %386 = vmatpush3.bf16.msra.mxu0 %v385_v28  ;;  %145 = vmatprep.mubr.f32.mxu0 %v15_v46  ;;  %v37_v52 = vld [vmem:[%s658_s1 + $0x58] sm:$0xff]  ;;  %v16_v53 = vld [vmem:[%s659_s0 + $0x10] sm:$0xff]  ;;  %v54_v54 = vld [vmem:[%s658_s1 + $0xe0] sm:$0xff]  ;;  %v427_v56 = vpack.c.bf16 %v69_v49, %v68_v48 }
   0xe   :  { %388 = vmatprep.subr.bf16.mxu0 %v387_v31  ;;  %v55_v55 = vld [vmem:[%s658_s1 + $0xe8] sm:$0xff]  ;;  %369 = vmatprep.mubr.f32.mxu1 %v16_v53  ;;  %v397_v57 = vpack.c.bf16 %v37_v52, %v36_v51  ;;  %v70_v58 = vld [vmem:[%s658_s1 + $0x160] sm:$0xff]  ;;  %v56_v63 = vld [vmem:[%s658_s1 + $0xf0] sm:$0xff] }
   0xf   :  { %418 = vmatpush3.bf16.msra.mxu1 %v415_v27  ;;  %v71_v59 = vld [vmem:[%s658_s1 + $0x168] sm:$0xff]  ;;  %v399_v60 = vpack.c.bf16 %v55_v55, %v54_v54  ;;  %v38_v61 = vld [vmem:[%s658_s1 + $0x60] sm:$0xff]  ;;  %v57_v0 = vld [vmem:[%s658_s1 + $0xf8] sm:$0xff] }
  0x10   :  { %420 = vmatprep.subr.bf16.mxu1 %v419_v36  ;;  %v39_v62 = vld [vmem:[%s658_s1 + $0x68] sm:$0xff]  ;;  %v431_v1 = vpack.c.bf16 %v71_v59, %v70_v58  ;;  %v72_v3 = vld [vmem:[%s658_s1 + $0x170] sm:$0xff]  ;;  %v73_v4 = vld [vmem:[%s658_s1 + $0x178] sm:$0xff]  ;;  %v403_v5 = vpack.c.bf16 %v57_v0, %v56_v63 }
  0x11   :  { %390 = vmatpush3.bf16.msra.mxu0 %v389_v37  ;;  %v401_v2 = vpack.c.bf16 %v39_v62, %v38_v61  ;;  %v40_v6 = vld [vmem:[%s658_s1 + $0x70] sm:$0xff]  ;;  %v41_v7 = vld [vmem:[%s658_s1 + $0x78] sm:$0xff]  ;;  %v435_v8 = vpack.c.bf16 %v73_v4, %v72_v3  ;;  %v14_v10 = vld [vmem:[%s659_s0] sm:$0xff] }
  0x12   :  { %392 = vmatprep.subr.bf16.mxu0 %v391_v40  ;;  %v405_v9 = vpack.c.bf16 %v41_v7, %v40_v6  ;;  %v18_v11 = vld [vmem:[%s659_s0 + $0x20] sm:$0xff]  ;;  %v19_v12 = vld [vmem:[%s659_s0 + $0x28] sm:$0xff]  ;;  %v17_v14 = vld [vmem:[%s659_s0 + $0x18] sm:$0xff] }
  0x13   :  { %422 = vmatpush3.bf16.msra.mxu1 %v419_v36  ;;  %v22_v13 = vld [vmem:[%s659_s0 + $0x40] sm:$0xff]  ;;  %v21_v15 = vld [vmem:[%s659_s0 + $0x38] sm:$0xff]  ;;  %v20_v17 = vld [vmem:[%s659_s0 + $0x30] sm:$0xff] }
  0x14   :  { %424 = vmatprep.subr.bf16.mxu1 %v423_v45  ;;  %v25_v16 = vld [vmem:[%s659_s0 + $0x58] sm:$0xff]  ;;  %v24_v18 = vld [vmem:[%s659_s0 + $0x50] sm:$0xff]  ;;  %v23_v19 = vld [vmem:[%s659_s0 + $0x48] sm:$0xff] }
  0x15   :  { %394 = vmatpush3.bf16.msra.mxu0 %v393_v47  ;;  %v272_v22 = vld [vmem:[%s660_s2] ss:$0 sm:$0xff] }
  0x16   :  { %396 = vmatprep.subr.bf16.mxu0 %v395_v50 }
  0x17   :  { %426 = vmatpush3.bf16.msra.mxu1 %v423_v45 }
  0x18   :  { %428 = vmatprep.subr.bf16.mxu1 %v427_v56 }
  0x19   :  { %398 = vmatpush3.bf16.msra.mxu0 %v397_v57 }
  0x1a   :  { %400 = vmatprep.subr.bf16.mxu0 %v399_v60 }
  0x1b   :  { %430 = vmatpush3.bf16.msra.mxu1 %v427_v56 }
  0x1c   :  { %432 = vmatprep.subr.bf16.mxu1 %v431_v1 }
  0x1d   :  { %402 = vmatpush3.bf16.msra.mxu0 %v401_v2 }
  0x1e   :  { %404 = vmatprep.subr.bf16.mxu0 %v403_v5 }
  0x1f   :  { %434 = vmatpush3.bf16.msra.mxu1 %v431_v1 }
  0x20   :  { %436 = vmatprep.subr.bf16.mxu1 %v435_v8 }
  0x21   :  { %406 = vmatpush3.bf16.msra.mxu0 %v405_v9 }
  0x23   :  { %438 = vmatpush3.bf16.msra.mxu1 %v435_v8 }
  0x24   :  { %146 = vmatmul.mubr.f32.vlgmr.msra.gmra.mrb[0].mxu0 %v14_v10 }
  0x25   :  { %150 = vmatprep.mubr.f32.mxu0 %v18_v11 }
  0x26   :  { %370 = vmatmul.mubr.f32.vlgmr.msra.gmra.mrb[0].mxu1 %v19_v12 }
  0x27   :  { %372 = vmatprep.mubr.f32.mxu1 %v22_v13 }
  0x28   :  { %151 = vmatmul.mubr.f32.gmra.mrb[2].mxu0 %v17_v14 }
  0x29   :  { %155 = vmatprep.mubr.f32.mxu0 %v21_v15 }
  0x2a   :  { %373 = vmatmul.mubr.f32.gmra.mrb[2].mxu1 %v25_v16 }
  0x2c   :  { %156 = vmatmul.mubr.f32.gmra.mrb[4].mxu0 %v20_v17 }
  0x2d   :  { %160 = vmatprep.mubr.f32.mxu0 %v24_v18 }
  0x30   :  { %161 = vmatmul.mubr.f32.gmra.mrb[6].mxu0 %v23_v19 }
  0xf7   :  { %v305_v20 = vpop.f32.mrb[0].mxu0 }
  0xf8   :  { %v306_v21 = vpop.f32.mrb[1].mxu0 }
  0xf9   :  { %v307_v23 = vadd.f32 %v306_v21, %v305_v20  ;;  %v371_v24 = vpop.f32.mrb[0].mxu1 }
  0xfa   :  { %v232_v25 = vpop.f32.mrb[1].mxu1 }
  0xfb   :  { %v308_v26 = vpop.f32.mrb[2].mxu0  ;;  %v148_v27 = vadd.f32 %v307_v23, %v272_v22 }
  0xfc   :  { %v309_v28 = vpop.f32.mrb[3].mxu0 }
  0xfd   :  { %v310_v29 = vadd.f32 %v309_v28, %v308_v26  ;;  %v233_v30 = vadd.f32 %v232_v25, %v148_v27  ;;  %v374_v31 = vpop.f32.mrb[2].mxu1 }
  0xfe   :  { %v242_v32 = vpop.f32.mrb[3].mxu1 }
  0xff   :  { %v153_v33 = vadd.f32 %v310_v29, %v272_v22  ;;  %vm251_vm1 = vcmp.ge.f32.partialorder %v233_v30, 0.0  ;;  %v255_v34 = vmul.f32 0.01, %v233_v30  ;;  %v311_v35 = vpop.f32.mrb[4].mxu0 }
 0x100   :  { %v312_v36 = vpop.f32.mrb[5].mxu0 }
 0x101   :  { %v238_v37 = vadd.f32 %v371_v24, %v153_v33  ;;  %v259_v38 = vsel %vm251_vm1, %v233_v30, %v255_v34  ;;  %v313_v39 = vadd.f32 %v312_v36, %v311_v35 }
 0x102   :  { %264 = vst.msk [vmem:[%s661_s3] sm:$0xff] %vm263_vm0, %v259_v38 }
 0x103   :  { %vm252_vm2 = vcmp.ge.f32.partialorder %v238_v37, 0.0  ;;  %v256_v40 = vmul.f32 0.01, %v238_v37  ;;  %v314_v41 = vpop.f32.mrb[6].mxu0  ;;  %v158_v42 = vadd.f32 %v313_v39, %v272_v22 }
 0x104   :  { %v315_v43 = vpop.f32.mrb[7].mxu0 }
 0x105   :  { %v260_v44 = vsel %vm252_vm2, %v238_v37, %v256_v40  ;;  %v316_v45 = vadd.f32 %v315_v43, %v314_v41  ;;  %v243_v46 = vadd.f32 %v242_v32, %v158_v42 }
 0x106   :  { %265 = vst.msk [vmem:[%s661_s3 + $0x8] sm:$0xff] %vm263_vm0, %v260_v44 }
 0x107   :  { %v163_v47 = vadd.f32 %v316_v45, %v272_v22  ;;  %vm253_vm3 = vcmp.ge.f32.partialorder %v243_v46, 0.0  ;;  %v257_v48 = vmul.f32 0.01, %v243_v46 }
 0x109   :  { %v248_v49 = vadd.f32 %v374_v31, %v163_v47  ;;  %v261_v50 = vsel %vm253_vm3, %v243_v46, %v257_v48 }
 0x10a   :  { %266 = vst.msk [vmem:[%s661_s3 + $0x10] sm:$0xff] %vm263_vm0, %v261_v50 }
 0x10b   :  { %vm254_vm4 = vcmp.ge.f32.partialorder %v248_v49, 0.0  ;;  %v258_v51 = vmul.f32 0.01, %v248_v49 }
 0x10d   :  { %v262_v52 = vsel %vm254_vm4, %v248_v49, %v258_v51 }
 0x10e   :  { %267 = vst.msk [vmem:[%s661_s3 + $0x18] sm:$0xff] %vm263_vm0, %v262_v52 }

// kernel: ssat_d_makeup_forward.7
= control target key start
LH: loop header
LB: loop body
LE: loop exit
PB: predicated region body
PF: predicated region fallthrough
CT: control target
= control target key end

     0   :  { %vm718_vm0 = vmmov 0   ;;  %vm420_vm2 = vcmask 7168   ;;  %s1078_s1 = inlined_call_operand.vmem [shape: f32[640,128], index: 1, kind: input, shape index: {}]   ;;  %s1079_s0 = inlined_call_operand.vmem [shape: f32[8,640], index: 0, kind: input, shape index: {}]   ;;  %s1080_s3 = inlined_call_operand.vmem [shape: f32[128,1], index: 3, kind: input, shape index: {}]   ;;  %s1081_s4 = inlined_call_operand.<no memory space> [shape: f32[1,1], index: 4, kind: input, shape index: {}]   ;;  %s1082_s2 = inlined_call_operand.vmem [shape: f32[1,128], index: 2, kind: input, shape index: {}]   ;;  %s1083_s5 = inlined_call_operand.vmem [shape: f32[8,1], index: 5, kind: output, shape index: {}]  }
   0x1   :  { %v43_v0 = vld [vmem:[%s1078_s1 + $0x80] sm:$0xff]  ;;  %v44_v1 = vld [vmem:[%s1078_s1 + $0x88] sm:$0xff]  ;;  %v45_v11 = vld [vmem:[%s1078_s1 + $0x90] sm:$0xff] }
   0x2   :  { %v27_v2 = vld [vmem:[%s1078_s1] sm:$0xff]  ;;  %v602_v3 = vpack.c.bf16 %v44_v1, %v43_v0  ;;  %v28_v4 = vld [vmem:[%s1078_s1 + $0x8] sm:$0xff]  ;;  %v46_v13 = vld [vmem:[%s1078_s1 + $0x98] sm:$0xff] }
   0x3   :  { %v75_v5 = vld [vmem:[%s1078_s1 + $0x180] sm:$0xff]  ;;  %v76_v6 = vld [vmem:[%s1078_s1 + $0x188] sm:$0xff]  ;;  %v604_v7 = vpack.c.bf16 %v28_v4, %v27_v2  ;;  %v29_v14 = vld [vmem:[%s1078_s1 + $0x10] sm:$0xff]  ;;  %v606_v16 = vpack.c.bf16 %v46_v13, %v45_v11 }
   0x4   :  { %v634_v8 = vpack.c.bf16 %v76_v6, %v75_v5  ;;  %v59_v9 = vld [vmem:[%s1078_s1 + $0x100] sm:$0xff]  ;;  %v60_v10 = vld [vmem:[%s1078_s1 + $0x108] sm:$0xff]  ;;  %603 = vmatprep.subr.bf16.mxu0 %v602_v3  ;;  %v30_v15 = vld [vmem:[%s1078_s1 + $0x18] sm:$0xff] }
   0x5   :  { %v636_v12 = vpack.c.bf16 %v60_v10, %v59_v9  ;;  %605 = vmatpush3.bf16.msra.mxu0 %v604_v7  ;;  %v608_v17 = vpack.c.bf16 %v30_v15, %v29_v14  ;;  %v77_v18 = vld [vmem:[%s1078_s1 + $0x190] sm:$0xff]  ;;  %v78_v19 = vld [vmem:[%s1078_s1 + $0x198] sm:$0xff]  ;;  %v47_v23 = vld [vmem:[%s1078_s1 + $0xa0] sm:$0xff] }
   0x6   :  { %635 = vmatprep.subr.bf16.mxu1 %v634_v8  ;;  %v61_v20 = vld [vmem:[%s1078_s1 + $0x110] sm:$0xff]  ;;  %v638_v21 = vpack.c.bf16 %v78_v19, %v77_v18  ;;  %v62_v22 = vld [vmem:[%s1078_s1 + $0x118] sm:$0xff]  ;;  %v48_v24 = vld [vmem:[%s1078_s1 + $0xa8] sm:$0xff]  ;;  %607 = vmatprep.subr.bf16.mxu0 %v606_v16 }
   0x7   :  { %637 = vmatpush3.bf16.msra.mxu1 %v636_v12  ;;  %v640_v25 = vpack.c.bf16 %v62_v22, %v61_v20  ;;  %v610_v26 = vpack.c.bf16 %v48_v24, %v47_v23  ;;  %v31_v27 = vld [vmem:[%s1078_s1 + $0x20] sm:$0xff]  ;;  %v32_v28 = vld [vmem:[%s1078_s1 + $0x28] sm:$0xff]  ;;  %v49_v35 = vld [vmem:[%s1078_s1 + $0xb0] sm:$0xff] }
   0x8   :  { %v79_v29 = vld [vmem:[%s1078_s1 + $0x1a0] sm:$0xff]  ;;  %639 = vmatprep.subr.bf16.mxu1 %v638_v21  ;;  %v80_v30 = vld [vmem:[%s1078_s1 + $0x1a8] sm:$0xff]  ;;  %v612_v33 = vpack.c.bf16 %v32_v28, %v31_v27  ;;  %v50_v36 = vld [vmem:[%s1078_s1 + $0xb8] sm:$0xff] }
   0x9   :  { %v63_v31 = vld [vmem:[%s1078_s1 + $0x120] sm:$0xff]  ;;  %v64_v32 = vld [vmem:[%s1078_s1 + $0x128] sm:$0xff]  ;;  %609 = vmatpush3.bf16.msra.mxu0 %v608_v17  ;;  %v642_v34 = vpack.c.bf16 %v80_v30, %v79_v29  ;;  %v33_v37 = vld [vmem:[%s1078_s1 + $0x30] sm:$0xff]  ;;  %v614_v39 = vpack.c.bf16 %v50_v36, %v49_v35 }
   0xa   :  { %611 = vmatprep.subr.bf16.mxu0 %v610_v26  ;;  %v644_v38 = vpack.c.bf16 %v64_v32, %v63_v31  ;;  %v34_v40 = vld [vmem:[%s1078_s1 + $0x38] sm:$0xff]  ;;  %v81_v41 = vld [vmem:[%s1078_s1 + $0x1b0] sm:$0xff]  ;;  %v51_v46 = vld [vmem:[%s1078_s1 + $0xc0] sm:$0xff] }
   0xb   :  { %641 = vmatpush3.bf16.msra.mxu1 %v640_v25  ;;  %v82_v42 = vld [vmem:[%s1078_s1 + $0x1b8] sm:$0xff]  ;;  %v65_v44 = vld [vmem:[%s1078_s1 + $0x130] sm:$0xff]  ;;  %v52_v47 = vld [vmem:[%s1078_s1 + $0xc8] sm:$0xff]  ;;  %v616_v48 = vpack.c.bf16 %v34_v40, %v33_v37 }
   0xc   :  { %643 = vmatprep.subr.bf16.mxu1 %v642_v34  ;;  %v646_v43 = vpack.c.bf16 %v82_v42, %v81_v41  ;;  %v66_v45 = vld [vmem:[%s1078_s1 + $0x138] sm:$0xff]  ;;  %v83_v49 = vld [vmem:[%s1078_s1 + $0x1c0] sm:$0xff]  ;;  %v84_v50 = vld [vmem:[%s1078_s1 + $0x1c8] sm:$0xff]  ;;  %v618_v52 = vpack.c.bf16 %v52_v47, %v51_v46 }
   0xd   :  { %613 = vmatpush3.bf16.msra.mxu0 %v612_v33  ;;  %v648_v51 = vpack.c.bf16 %v66_v45, %v65_v44  ;;  %v35_v53 = vld [vmem:[%s1078_s1 + $0x40] sm:$0xff]  ;;  %v36_v54 = vld [vmem:[%s1078_s1 + $0x48] sm:$0xff]  ;;  %v650_v56 = vpack.c.bf16 %v84_v50, %v83_v49  ;;  %v53_v58 = vld [vmem:[%s1078_s1 + $0xd0] sm:$0xff]  ;;  %v719_v45 = vmov 0.0  }
   0xe   :  { %615 = vmatprep.subr.bf16.mxu0 %v614_v39  ;;  %v67_v55 = vld [vmem:[%s1078_s1 + $0x140] sm:$0xff]  ;;  %v68_v57 = vld [vmem:[%s1078_s1 + $0x148] sm:$0xff]  ;;  %v54_v59 = vld [vmem:[%s1078_s1 + $0xd8] sm:$0xff]  ;;  %v620_v62 = vpack.c.bf16 %v36_v54, %v35_v53 }
   0xf   :  { %645 = vmatpush3.bf16.msra.mxu1 %v644_v38  ;;  %v85_v60 = vld [vmem:[%s1078_s1 + $0x1d0] sm:$0xff]  ;;  %v86_v61 = vld [vmem:[%s1078_s1 + $0x1d8] sm:$0xff]  ;;  %v652_v63 = vpack.c.bf16 %v68_v57, %v67_v55  ;;  %v622_v0 = vpack.c.bf16 %v54_v59, %v53_v58  ;;  %v55_v6 = vld [vmem:[%s1078_s1 + $0xe0] sm:$0xff]  ;;  %v717_v38 = vmov 0.0|0.0  }
  0x10   :  { %647 = vmatprep.subr.bf16.mxu1 %v646_v43  ;;  %v37_v1 = vld [vmem:[%s1078_s1 + $0x50] sm:$0xff]  ;;  %v38_v2 = vld [vmem:[%s1078_s1 + $0x58] sm:$0xff]  ;;  %v654_v4 = vpack.c.bf16 %v86_v61, %v85_v60  ;;  %v56_v7 = vld [vmem:[%s1078_s1 + $0xe8] sm:$0xff] }
  0x11   :  { %617 = vmatpush3.bf16.msra.mxu0 %v616_v48  ;;  %v69_v3 = vld [vmem:[%s1078_s1 + $0x150] sm:$0xff]  ;;  %v70_v5 = vld [vmem:[%s1078_s1 + $0x158] sm:$0xff]  ;;  %v87_v8 = vld [vmem:[%s1078_s1 + $0x1e0] sm:$0xff]  ;;  %v624_v10 = vpack.c.bf16 %v38_v2, %v37_v1  ;;  %v626_v14 = vpack.c.bf16 %v56_v7, %v55_v6 }
  0x12   :  { %619 = vmatprep.subr.bf16.mxu0 %v618_v52  ;;  %v88_v9 = vld [vmem:[%s1078_s1 + $0x1e8] sm:$0xff]  ;;  %v39_v11 = vld [vmem:[%s1078_s1 + $0x60] sm:$0xff]  ;;  %v656_v13 = vpack.c.bf16 %v70_v5, %v69_v3  ;;  %v57_v19 = vld [vmem:[%s1078_s1 + $0xf0] sm:$0xff] }
  0x13   :  { %649 = vmatpush3.bf16.msra.mxu1 %v648_v51  ;;  %v23_v12 = vld [vmem:[%s1079_s0 + $0x8] sm:$0xff]  ;;  %v71_v16 = vld [vmem:[%s1078_s1 + $0x160] sm:$0xff]  ;;  %v658_v18 = vpack.c.bf16 %v88_v9, %v87_v8  ;;  %v58_v20 = vld [vmem:[%s1078_s1 + $0xf8] sm:$0xff] }
  0x14   :  { %651 = vmatprep.subr.bf16.mxu1 %v650_v56  ;;  %v40_v15 = vld [vmem:[%s1078_s1 + $0x68] sm:$0xff]  ;;  %178 = vmatprep.mubr.f32.mxu0 %v23_v12  ;;  %v25_v21 = vld [vmem:[%s1079_s0 + $0x18] sm:$0xff]  ;;  %v89_v22 = vld [vmem:[%s1078_s1 + $0x1f0] sm:$0xff]  ;;  %v630_v26 = vpack.c.bf16 %v58_v20, %v57_v19 }
  0x15   :  { %621 = vmatpush3.bf16.msra.mxu0 %v620_v62  ;;  %v72_v17 = vld [vmem:[%s1078_s1 + $0x168] sm:$0xff]  ;;  %v90_v23 = vld [vmem:[%s1078_s1 + $0x1f8] sm:$0xff]  ;;  %248 = vmatprep.mubr.f32.mxu1 %v25_v21  ;;  %v628_v24 = vpack.c.bf16 %v40_v15, %v39_v11  ;;  %v41_v27 = vld [vmem:[%s1078_s1 + $0x70] sm:$0xff] }
  0x16   :  { %623 = vmatprep.subr.bf16.mxu0 %v622_v0  ;;  %v660_v25 = vpack.c.bf16 %v72_v17, %v71_v16  ;;  %v42_v28 = vld [vmem:[%s1078_s1 + $0x78] sm:$0xff]  ;;  %v662_v29 = vpack.c.bf16 %v90_v23, %v89_v22  ;;  %v73_v30 = vld [vmem:[%s1078_s1 + $0x170] sm:$0xff]  ;;  %v91_v34 = vld [vmem:[%s1078_s1 + $0x200] sm:$0xff]  ;;  %v10_v23 = vstv %s1081_s4 }
  0x17   :  { %653 = vmatpush3.bf16.msra.mxu1 %v652_v63  ;;  %v74_v31 = vld [vmem:[%s1078_s1 + $0x178] sm:$0xff]  ;;  %v632_v32 = vpack.c.bf16 %v42_v28, %v41_v27  ;;  %v92_v35 = vld [vmem:[%s1078_s1 + $0x208] sm:$0xff]  ;;  %v22_v36 = vld [vmem:[%s1079_s0] sm:$0xff]  ;;  %11 = vst [vmem:[#allocation2] sm:$0x1] %v10_v23 }
  0x18   :  { %655 = vmatprep.subr.bf16.mxu1 %v654_v4  ;;  %v664_v33 = vpack.c.bf16 %v74_v31, %v73_v30  ;;  %v667_v37 = vpack.c.bf16 %v92_v35, %v91_v34  ;;  %v24_v39 = vld [vmem:[%s1079_s0 + $0x10] sm:$0xff]  ;;  %v94_v41 = vld [vmem:[%s1078_s1 + $0x218] sm:$0xff]  ;;  %v95_v43 = vld [vmem:[%s1078_s1 + $0x220] sm:$0xff] }
  0x19   :  { %625 = vmatpush3.bf16.msra.mxu0 %v624_v10  ;;  %v93_v40 = vld [vmem:[%s1078_s1 + $0x210] sm:$0xff]  ;;  %v96_v44 = vld [vmem:[%s1078_s1 + $0x228] sm:$0xff]  ;;  %v98_v48 = vld [vmem:[%s1078_s1 + $0x238] sm:$0xff] }
  0x1a   :  { %627 = vmatprep.subr.bf16.mxu0 %v626_v14  ;;  %v670_v42 = vpack.c.bf16 %v94_v41, %v93_v40  ;;  %v673_v46 = vpack.c.bf16 %v96_v44, %v95_v43  ;;  %v97_v47 = vld [vmem:[%s1078_s1 + $0x230] sm:$0xff]  ;;  %v99_v50 = vld [vmem:[%s1078_s1 + $0x240] sm:$0xff]  ;;  %v100_v51 = vld [vmem:[%s1078_s1 + $0x248] sm:$0xff] }
  0x1b   :  { %657 = vmatpush3.bf16.msra.mxu1 %v656_v13  ;;  %v676_v49 = vpack.c.bf16 %v98_v48, %v97_v47  ;;  %v679_v52 = vpack.c.bf16 %v100_v51, %v99_v50  ;;  %v101_v53 = vld [vmem:[%s1078_s1 + $0x250] sm:$0xff]  ;;  %v102_v54 = vld [vmem:[%s1078_s1 + $0x258] sm:$0xff]  ;;  %v103_v56 = vld [vmem:[%s1078_s1 + $0x260] sm:$0xff] }
  0x1c   :  { %659 = vmatprep.subr.bf16.mxu1 %v658_v18  ;;  %v682_v55 = vpack.c.bf16 %v102_v54, %v101_v53  ;;  %v104_v57 = vld [vmem:[%s1078_s1 + $0x268] sm:$0xff]  ;;  %v105_v59 = vld [vmem:[%s1078_s1 + $0x270] sm:$0xff]  ;;  %v106_v60 = vld [vmem:[%s1078_s1 + $0x278] sm:$0xff] }
  0x1d   :  { %629 = vmatpush3.bf16.msra.mxu0 %v628_v24  ;;  %v685_v58 = vpack.c.bf16 %v104_v57, %v103_v56  ;;  %v688_v61 = vpack.c.bf16 %v106_v60, %v105_v59  ;;  %v26_v62 = vld [vmem:[%s1079_s0 + $0x20] sm:$0xff]  ;;  %v328_v0 = vld [vmem:[%s1080_s3 + $0x8] sm:$0xff]  ;;  %v329_v1 = vld [vmem:[%s1080_s3 + $0x10] sm:$0xff] }
  0x1e   :  { %631 = vmatprep.subr.bf16.mxu0 %v630_v26  ;;  %v327_v63 = vld [vmem:[%s1080_s3] sm:$0xff]  ;;  %v330_v3 = vld [vmem:[%s1080_s3 + $0x18] sm:$0xff]  ;;  %v332_v6 = vld [vmem:[%s1080_s3 + $0x28] sm:$0xff] }
  0x1f   :  { %661 = vmatpush3.bf16.msra.mxu1 %v660_v25  ;;  %v691_v2 = vpack.c.bf16 %v328_v0, %v327_v63  ;;  %v694_v4 = vpack.c.bf16 %v330_v3, %v329_v1  ;;  %v331_v5 = vld [vmem:[%s1080_s3 + $0x20] sm:$0xff]  ;;  %v333_v8 = vld [vmem:[%s1080_s3 + $0x30] sm:$0xff]  ;;  %v334_v9 = vld [vmem:[%s1080_s3 + $0x38] sm:$0xff] }
  0x20   :  { %663 = vmatprep.subr.bf16.mxu1 %v662_v29  ;;  %v697_v7 = vpack.c.bf16 %v332_v6, %v331_v5  ;;  %v700_v10 = vpack.c.bf16 %v334_v9, %v333_v8  ;;  %v335_v11 = vld [vmem:[%s1080_s3 + $0x40] sm:$0xff]  ;;  %v336_v12 = vld [vmem:[%s1080_s3 + $0x48] sm:$0xff]  ;;  %v337_v14 = vld [vmem:[%s1080_s3 + $0x50] sm:$0xff] }
  0x21   :  { %633 = vmatpush3.bf16.msra.mxu0 %v632_v32  ;;  %v703_v13 = vpack.c.bf16 %v336_v12, %v335_v11  ;;  %v338_v15 = vld [vmem:[%s1080_s3 + $0x58] sm:$0xff]  ;;  %v339_v17 = vld [vmem:[%s1080_s3 + $0x60] sm:$0xff]  ;;  %v340_v18 = vld [vmem:[%s1080_s3 + $0x68] sm:$0xff] }
  0x22   :  { %666 = vmatprep.subr.bf16.mxu0 %v717_v38  ;;  %v706_v16 = vpack.c.bf16 %v338_v15, %v337_v14  ;;  %v709_v19 = vpack.c.bf16 %v340_v18, %v339_v17  ;;  %v341_v20 = vld [vmem:[%s1080_s3 + $0x70] sm:$0xff]  ;;  %v342_v21 = vld [vmem:[%s1080_s3 + $0x78] sm:$0xff]  ;;  %v426_v25 = vld [vmem:[%s1082_s2] ss:$0 sm:$0xff] }
  0x23   :  { %665 = vmatpush3.bf16.msra.mxu1 %v664_v33  ;;  %v712_v22 = vpack.c.bf16 %v342_v21, %v341_v20 }
  0x24   :  { %690 = vmatprep.subr.bf16.mxu1 %v717_v38  ;;  %179 = vmatmul.mubr.f32.vlgmr.msra.gmra.mrb[0].mxu0 %v22_v36 }
  0x25   :  { %668 = vmatpush3.bf16.msra.mxu0 %v667_v37  ;;  %564 = vmatprep.mubr.msk.f32.mxu0 %vm718_vm0, %v719_v45 }
  0x26   :  { %249 = vmatmul.mubr.f32.vlgmr.msra.gmra.mrb[0].mxu1 %v24_v39  ;;  %669 = vmatprep.subr.bf16.mxu0 %v717_v38 }
  0x27   :  { %599 = vmatprep.mubr.msk.f32.mxu1 %vm718_vm0, %v719_v45  ;;  %692 = vmatpush3.bf16.msra.mxu1 %v691_v2 }
  0x28   :  { %693 = vmatprep.subr.bf16.mxu1 %v717_v38 }
  0x29   :  { %671 = vmatpush3.bf16.msra.mxu0 %v670_v42 }
  0x2a   :  { %672 = vmatprep.subr.bf16.mxu0 %v717_v38 }
  0x2b   :  { %695 = vmatpush3.bf16.msra.mxu1 %v694_v4 }
  0x2c   :  { %696 = vmatprep.subr.bf16.mxu1 %v717_v38 }
  0x2d   :  { %674 = vmatpush3.bf16.msra.mxu0 %v673_v46 }
  0x2e   :  { %675 = vmatprep.subr.bf16.mxu0 %v717_v38 }
  0x2f   :  { %698 = vmatpush3.bf16.msra.mxu1 %v697_v7 }
  0x30   :  { %699 = vmatprep.subr.bf16.mxu1 %v717_v38 }
  0x31   :  { %677 = vmatpush3.bf16.msra.mxu0 %v676_v49 }
  0x32   :  { %678 = vmatprep.subr.bf16.mxu0 %v717_v38 }
  0x33   :  { %701 = vmatpush3.bf16.msra.mxu1 %v700_v10 }
  0x34   :  { %702 = vmatprep.subr.bf16.mxu1 %v717_v38 }
  0x35   :  { %680 = vmatpush3.bf16.msra.mxu0 %v679_v52 }
  0x36   :  { %681 = vmatprep.subr.bf16.mxu0 %v717_v38 }
  0x37   :  { %704 = vmatpush3.bf16.msra.mxu1 %v703_v13 }
  0x38   :  { %705 = vmatprep.subr.bf16.mxu1 %v717_v38 }
  0x39   :  { %683 = vmatpush3.bf16.msra.mxu0 %v682_v55 }
  0x3a   :  { %684 = vmatprep.subr.bf16.mxu0 %v717_v38 }
  0x3b   :  { %707 = vmatpush3.bf16.msra.mxu1 %v706_v16 }
  0x3c   :  { %708 = vmatprep.subr.bf16.mxu1 %v717_v38 }
  0x3d   :  { %686 = vmatpush3.bf16.msra.mxu0 %v685_v58 }
  0x3e   :  { %687 = vmatprep.subr.bf16.mxu0 %v717_v38 }
  0x3f   :  { %710 = vmatpush3.bf16.msra.mxu1 %v709_v19 }
  0x40   :  { %711 = vmatprep.subr.bf16.mxu1 %v717_v38  ;;  %v427_v38 = vld [vmem:[#allocation2] ss:$0 sm:$0xff] }
  0x41   :  { %689 = vmatpush3.bf16.msra.mxu0 %v688_v61 }
  0x43   :  { %713 = vmatpush3.bf16.msra.mxu1 %v712_v22 }
  0x44   :  { %565 = vmatmul.mubr.f32.vlgmr.msra.gmra.mrb[2].mxu0 %v26_v62 }
  0xf7   :  { %v460_v24 = vpop.f32.mrb[0].mxu0 }
  0xf8   :  { %v461_v26 = vpop.f32.mrb[1].mxu0 }
  0xf9   :  { %v495_v27 = vpop.f32.mrb[0].mxu1  ;;  %v462_v28 = vadd.f32 %v461_v26, %v460_v24 }
  0xfa   :  { %v496_v29 = vpop.f32.mrb[1].mxu1 }
  0xfb   :  { %v497_v30 = vadd.f32 %v496_v29, %v495_v27  ;;  %v181_v31 = vadd.f32 %v462_v28, %v426_v25 }
  0xfd   :  { %v251_v32 = vadd.f32 %v497_v30, %v181_v31 }
 0x117   :  { %v320_v33 = vpop.f32.mrb[2].mxu0 }
 0x118   :  { %v321_v34 = vadd.f32 %v320_v33, %v251_v32  ;;  %v566_v35 = vpop.f32.mrb[3].mxu0 }
 0x11a   :  { %vm324_vm1 = vcmp.ge.f32.partialorder %v321_v34, 0.0  ;;  %v325_v36 = vmul.f32 0.01, %v321_v34 }
 0x11c   :  { %v326_v37 = vsel %vm324_vm1, %v321_v34, %v325_v36 }
 0x11d   :  { %600 = vmatmul.mubr.f32.vlgmr.msra.gmra.mrb[2].mxu1 %v326_v37 }
 0x1f0   :  { %v416_v39 = vpop.f32.mrb[2].mxu1 }
 0x1f1   :  { %v417_v40 = vadd.f32 %v427_v38, %v416_v39  ;;  %v601_v41 = vpop.f32.mrb[3].mxu1 }
 0x1f3   :  { %421 = vst.msk [vmem:[%s1083_s5] sm:$0xff] %vm420_vm2, %v417_v40 }

</bundles_post_ra>
